<compile_context>
chip_gen: v7x
topology: tpu7x:2x2x1
jax: 0.10.0
libtpu: 0.0.40
codegen_flags: <defaults>
</compile_context>

<pallas_src>
import math

import jax
import jax.numpy as jnp
from jax.experimental import pallas as pl
from jax.experimental.pallas import tpu as pltpu


# ----------------------------------------------------------------------------
# Coordinate construction (port of the torch buffer setup in __init__)
# ----------------------------------------------------------------------------
def shift_coords(coords, x_half, y_half, z_half, nx, ny, nz, flip=False):
    """Shift coordinates so the DC component lands at (0, 0, 0) on even grids."""
    alpha = 1.0 if flip else -1.0
    xs = coords[..., 0] + (alpha * x_half / (nx // 2) if nx % 2 == 0 else 0.0)
    ys = coords[..., 1] + (alpha * y_half / (ny // 2) if ny % 2 == 0 else 0.0)
    zs = coords[..., 2] + (alpha * z_half / (nz // 2) if nz % 2 == 0 else 0.0)
    return jnp.stack([xs, ys, zs], axis=-1)


def make_plane_coords(img_sz):
    lin = jnp.linspace(-1.0, 1.0, img_sz, dtype=jnp.float32)
    X, Y = jnp.meshgrid(lin, lin, indexing="ij")
    coords = jnp.stack([Y, X, jnp.zeros_like(X)], axis=-1)
    coords = shift_coords(coords, 1.0, 1.0, 0.0, img_sz, img_sz, 1)
    return coords.reshape(-1, 3).astype(jnp.float32)


# ----------------------------------------------------------------------------
# Pallas kernel: feature-major FourierNet slice (out_features == 2)
#   coords_ref : (3, tile)           plane coords, points on the 128-lane axis
#   mt_ref     : (bb, pe_dim, 3)     2*pi * (rotmat_b @ peB)^T   (per batch)
#   zb_ref     : (bb, H, 1)          z_b @ W1z + b1              (per batch)
#   w1s_ref    : (H, pe_dim)  bf16   W1_sin^T
#   w1c_ref    : (H, pe_dim)  bf16   W1_cos^T
#   w2_ref     : (H, H)       bf16   W2^T
#   b2_ref     : (H, 1)       f32
#   wo_ref     : (2, H)       bf16   Wout^T
#   bo_ref     : (2, 1)       f32
#   out_ref    : (bb, 2, tile) f32   (real, imag) rows, lane-dense store
# ----------------------------------------------------------------------------
def _fourier_slice_kernel(coords_ref, mt_ref, zb_ref, w1s_ref, w1c_ref,
                          w2_ref, b2_ref, wo_ref, bo_ref, out_ref):
    cx = coords_ref[0:1, :]                       # (1, tile)
    cy = coords_ref[1:2, :]
    cz = coords_ref[2:3, :]
    bb = out_ref.shape[0]
    for b in range(bb):                           # static unroll, bb is small
        mt = mt_ref[b]                            # (pe_dim, 3), f32
        # Rotation folded into the PE matrix; the K=3 projection is done as
        # VPU broadcast-FMAs rather than a <3%-utilized MXU pass.
        proj = mt[:, 0:1] * cx + mt[:, 1:2] * cy + mt[:, 2:3] * cz   # (pe, tile)
        # NOTE: sin/cos lower to VPU polynomials; a shared range reduction
        # (cos(x) = sin(x + pi/2) on the reduced argument) would cut VALU work
        # further if a bundle dump shows VALU as the saturating slot.
        sin_p = jnp.sin(proj)
        cos_p = jnp.cos(proj)
        # Layer 1: two accumulating bf16 MXU dots (no sublane concat) plus the
        # hoisted latent/bias term  z @ W1z + b1.
        h = (jnp.dot(w1s_ref[...], sin_p.astype(jnp.bfloat16),
                     preferred_element_type=jnp.float32)
             + jnp.dot(w1c_ref[...], cos_p.astype(jnp.bfloat16),
                       preferred_element_type=jnp.float32)
             + zb_ref[b])
        h = jnp.maximum(h, 0.0)                   # (H, tile)
        # Layer 2 (D == 2 hidden layers).
        h = jnp.dot(w2_ref[...], h.astype(jnp.bfloat16),
                    preferred_element_type=jnp.float32) + b2_ref[...]
        h = jnp.maximum(h, 0.0)                   # (H, tile)
        # Output head: (real, imag) rows, points stay lane-dense.
        out_ref[b] = (jnp.dot(wo_ref[...], h.astype(jnp.bfloat16),
                              preferred_element_type=jnp.float32)
                      + bo_ref[...])              # (2, tile)
    # TODO(synk): force_symmetry (Hermitian enforcement), the out_features==1
    # Hartley->Fourier path and the mask_rad != 1 circular window/scatter are
    # not implemented; this kernel covers the mask_rad==1, out_features==2 branch.


def implicit_fourier_volume_forward(z, rotmat, plane_coords, params, img_sz,
                                    tile_target=None):
    """Returns the complex Fourier slice of shape (B, 1, img_sz, img_sz)."""
    B = int(rotmat.shape[0])
    N = int(plane_coords.shape[0])
    pe_dim = int(params["peB"].shape[1])
    H = int(params["w2"].shape[0])
    hi = jax.lax.Precision.HIGHEST

    # ---- generation-aware budgets (v5e/v6e: 128 MiB VMEM, v7x: 64 MiB) -----
    try:
        vmem_cap = int(pltpu.get_tpu_info().vmem_capacity_bytes)
    except Exception:
        vmem_cap = 64 << 20
    if vmem_cap >= (100 << 20):          # v5e / v6e: plenty of VMEM
        default_tile, vmem_budget = 8192, 96 << 20
    else:                                # v7x (or unknown): leave headroom
        default_tile, vmem_budget = 4096, min(48 << 20, (vmem_cap * 3) // 4)
    if tile_target is None:
        tile_target = default_tile

    # ---- batch-constant precompute (cheap, plain JAX, full f32 precision) ---
    # Fold the rotation into the PE matrix:  proj = 2*pi*(R @ B)^T @ coords^T.
    mt = (2.0 * math.pi) * jnp.swapaxes(
        jnp.einsum("bcd,dp->bcp", rotmat.astype(jnp.float32), params["peB"],
                   precision=hi), 1, 2)                            # (B, pe, 3)
    # Hoist the latent contribution of layer 1 (identical for every tile).
    if z is None:
        zb = jnp.broadcast_to(params["b1"], (B, H))[..., None]
    else:
        zb = (jnp.dot(z.astype(jnp.float32), params["w1z"], precision=hi)
              + params["b1"])[..., None]                            # (B, H, 1)
    # Feature-major bf16 weights for the MXU; biases stay f32.
    w1s = params["w1s"].T.astype(jnp.bfloat16)                      # (H, pe)
    w1c = params["w1c"].T.astype(jnp.bfloat16)                      # (H, pe)
    w2 = params["w2"].T.astype(jnp.bfloat16)                        # (H, H)
    b2 = params["b2"].T.astype(jnp.float32)                         # (H, 1)
    wo = params["wo"].T.astype(jnp.bfloat16)                        # (2, H)
    bo = params["bo"].T.astype(jnp.float32)                         # (2, 1)
    coords_t = plane_coords.T.astype(jnp.float32)                   # (3, N)

    # ---- tiling: points on the 128-lane axis, ragged N handled by padding --
    tile = max(128, min(int(tile_target), ((N + 127) // 128) * 128))
    tile = ((tile + 127) // 128) * 128
    # Rough live-intermediate footprint for one unrolled batch item
    # (f32 proj/sin/cos/h + transient bf16 copies), used only for sizing.
    per_b = lambda t: t * (12 * pe_dim + 8 * H + 16)
    while tile > 128 and per_b(tile) > (2 * vmem_budget) // 3:
        tile //= 2
    tile = max(128, (tile // 128) * 128)
    n_pad = pl.cdiv(N, tile) * tile
    if n_pad != N:
        coords_t = jnp.pad(coords_t, ((0, 0), (0, n_pad - N)))
    n_tiles = n_pad // tile

    # Batch block: largest divisor of B (<= 8) whose unrolled intermediates
    # still fit -> small problems collapse into one / a few grid steps.
    bb = 1
    for d in range(1, min(B, 8) + 1):
        if B % d == 0 and d * per_b(tile) <= vmem_budget // 3:
            bb = d
    grid = (n_tiles, B // bb)

    def _call(single_buffer_weights):
        def const_spec(shape):
            # Grid-invariant blocks: second pipeline buffer is wasted VMEM.
            if single_buffer_weights:
                return pl.BlockSpec(shape, lambda t, g: (0,) * len(shape),
                                    pipeline_mode=pl.Buffered(1))
            return pl.BlockSpec(shape, lambda t, g: (0,) * len(shape))

        grid_spec = pltpu.PrefetchScalarGridSpec(
            num_scalar_prefetch=0,
            grid=grid,
            in_specs=[
                pl.BlockSpec((3, tile), lambda t, g: (0, t)),          # coords^T
                pl.BlockSpec((bb, pe_dim, 3), lambda t, g: (g, 0, 0)),  # 2pi(RB)^T
                pl.BlockSpec((bb, H, 1), lambda t, g: (g, 0, 0)),       # z@W1z+b1
                const_spec((H, pe_dim)),                                # W1_sin^T
                const_spec((H, pe_dim)),                                # W1_cos^T
                const_spec((H, H)),                                     # W2^T
                const_spec((H, 1)),                                     # b2^T
                const_spec((2, H)),                                     # Wo^T
                const_spec((2, 1)),                                     # bo^T
            ],
            out_specs=pl.BlockSpec((bb, 2, tile), lambda t, g: (g, 0, t)),
        )
        return pl.pallas_call(
            _fourier_slice_kernel,
            out_shape=jax.ShapeDtypeStruct((B, 2, n_pad), jnp.float32),
            grid_spec=grid_spec,
            compiler_params=pltpu.CompilerParams(
                dimension_semantics=("parallel", "parallel"),
                vmem_limit_bytes=int(vmem_budget)),
        )(coords_t, mt, zb, w1s, w1c, w2, b2, wo, bo)

    try:
        out = jax.block_until_ready(_call(True))
    except Exception:
        # Fallback: if single-buffered (Buffered(1)) weight blocks are not
        # supported by this toolchain, default double buffering always works.
        out = _call(False)

    # Contiguous real/imag slabs -> complex64 slice (B, 1, S, S).
    fplane = jax.lax.complex(out[:, 0, :N], out[:, 1, :N])
    return fplane.reshape(B, img_sz, img_sz)[:, None, :, :]


# ----------------------------------------------------------------------------
# Pure-JAX reference (original module math, f32 throughout) for correctness
# ----------------------------------------------------------------------------
def reference_forward(z, rotmat, plane_coords, params, img_sz):
    hi = jax.lax.Precision.HIGHEST
    B = rotmat.shape[0]
    rc = jnp.einsum("nc,bcd->bnd", plane_coords, rotmat, precision=hi)
    proj = (2.0 * math.pi) * jnp.einsum("bnd,dp->bnp", rc, params["peB"],
                                        precision=hi)
    h = (jnp.einsum("bnp,ph->bnh", jnp.sin(proj), params["w1s"], precision=hi)
         + jnp.einsum("bnp,ph->bnh", jnp.cos(proj), params["w1c"], precision=hi)
         + jnp.einsum("bz,zh->bh", z, params["w1z"], precision=hi)[:, None, :]
         + params["b1"][None])
    h = jnp.maximum(h, 0.0)
    h = jnp.maximum(jnp.einsum("bnh,hk->bnk", h, params["w2"], precision=hi)
                    + params["b2"][None], 0.0)
    out = (jnp.einsum("bnh,hk->bnk", h, params["wo"], precision=hi)
           + params["bo"][None])
    fplane = out[..., 0] + 1j * out[..., 1]
    return fplane.reshape(B, img_sz, img_sz)[:, None, :, :]


# ----------------------------------------------------------------------------
# Deterministic parameter init (FourierNet: gaussian PE + D=2 hidden MLP)
# ----------------------------------------------------------------------------
def init_params(key, z_dim, pe_dim, hidden):
    ks = jax.random.split(key, 9)
    in_dim = 2 * pe_dim + z_dim
    s1 = 1.0 / math.sqrt(in_dim)
    s2 = 1.0 / math.sqrt(hidden)
    f32 = jnp.float32
    return {
        "peB": jax.random.normal(ks[0], (3, pe_dim), f32),
        "w1s": jax.random.normal(ks[1], (pe_dim, hidden), f32) * s1,
        "w1c": jax.random.normal(ks[2], (pe_dim, hidden), f32) * s1,
        "w1z": jax.random.normal(ks[3], (z_dim, hidden), f32) * s1,
        "b1":  jax.random.normal(ks[4], (1, hidden), f32) * s1,
        "w2":  jax.random.normal(ks[5], (hidden, hidden), f32) * s2,
        "b2":  jax.random.normal(ks[6], (1, hidden), f32) * s2,
        "wo":  jax.random.normal(ks[7], (hidden, 2), f32) * s2,
        "bo":  jax.random.normal(ks[8], (1, 2), f32) * s2,
    }


if __name__ == "__main__":
    img_sz = 16      # -> 256 plane coordinates per batch element
    z_dim = 4
    pe_dim = 8
    hidden = 32
    B = 2

    key = jax.random.PRNGKey(0)
    k_par, k_z, k_rot = jax.random.split(key, 3)

    params = init_params(k_par, z_dim, pe_dim, hidden)
    plane_coords = make_plane_coords(img_sz)                      # (256, 3)
    z = jax.random.normal(k_z, (B, z_dim), jnp.float32)           # (2, 4)
    # Proper rotation matrices via QR of random normals.
    rotmat = jnp.linalg.qr(jax.random.normal(k_rot, (B, 3, 3), jnp.float32))[0]
    rotmat = rotmat.astype(jnp.float32)

    fplane = implicit_fourier_volume_forward(z, rotmat, plane_coords, params,
                                             img_sz)
    fplane = jax.block_until_ready(fplane)
    assert fplane.shape == (B, 1, img_sz, img_sz)
    assert jnp.iscomplexobj(fplane)

    ref = reference_forward(z, rotmat, plane_coords, params, img_sz)
    scale = float(jnp.max(jnp.abs(ref)))
    max_diff = float(jnp.max(jnp.abs(fplane - ref)))
    # bf16 MXU operands (f32 accumulation) in the kernel -> relative tolerance.
    assert max_diff <= 5e-2 * scale + 1e-3, (
        f"mismatch vs reference: {max_diff} (ref scale {scale})")

    print("KERNEL_OK")
</pallas_src>

<mosaic_0001>
module attributes {stable_mosaic.version = 11 : i64} {
  func.func @_fourier_slice_kernel(%arg0: i32, %arg1: i32, %arg2: memref<3x256xf32, #tpu.memory_space<vmem>>, %arg3: memref<2x8x3xf32, #tpu.memory_space<vmem>>, %arg4: memref<2x32x1xf32, #tpu.memory_space<vmem>>, %arg5: memref<32x8xbf16, #tpu.memory_space<vmem>>, %arg6: memref<32x8xbf16, #tpu.memory_space<vmem>>, %arg7: memref<32x32xbf16, #tpu.memory_space<vmem>>, %arg8: memref<32x1xf32, #tpu.memory_space<vmem>>, %arg9: memref<2x32xbf16, #tpu.memory_space<vmem>>, %arg10: memref<2x1xf32, #tpu.memory_space<vmem>>, %arg11: memref<2x2x256xf32, #tpu.memory_space<vmem>>) attributes {dimension_semantics = [#tpu.dimension_semantics<parallel>, #tpu.dimension_semantics<parallel>], iteration_bounds = array<i64: 1, 1>, scalar_prefetch = 0 : i64, scratch_operands = 0 : i64, tpu.core_type = #tpu.core_type<tc>, window_params = [{transform_indices = @transform_0, window_bounds = array<i64: 3, 256>}, {transform_indices = @transform_1, window_bounds = array<i64: 2, 8, 3>}, {transform_indices = @transform_2, window_bounds = array<i64: 2, 32, 1>}, {pipeline_mode = #tpu.pipeline_mode<synchronous>, transform_indices = @transform_3, window_bounds = array<i64: 32, 8>}, {pipeline_mode = #tpu.pipeline_mode<synchronous>, transform_indices = @transform_4, window_bounds = array<i64: 32, 8>}, {pipeline_mode = #tpu.pipeline_mode<synchronous>, transform_indices = @transform_5, window_bounds = array<i64: 32, 32>}, {pipeline_mode = #tpu.pipeline_mode<synchronous>, transform_indices = @transform_6, window_bounds = array<i64: 32, 1>}, {pipeline_mode = #tpu.pipeline_mode<synchronous>, transform_indices = @transform_7, window_bounds = array<i64: 2, 32>}, {pipeline_mode = #tpu.pipeline_mode<synchronous>, transform_indices = @transform_8, window_bounds = array<i64: 2, 1>}, {transform_indices = @transform_9, window_bounds = array<i64: 2, 2, 256>}]} {
    %c0 = arith.constant 0 : index
    %c0_0 = arith.constant 0 : index
    %0 = vector.load %arg2[%c0, %c0_0] : memref<3x256xf32, #tpu.memory_space<vmem>>, vector<1x256xf32>
    %c1 = arith.constant 1 : index
    %c0_1 = arith.constant 0 : index
    %1 = vector.load %arg2[%c1, %c0_1] : memref<3x256xf32, #tpu.memory_space<vmem>>, vector<1x256xf32>
    %c2 = arith.constant 2 : index
    %c0_2 = arith.constant 0 : index
    %2 = vector.load %arg2[%c2, %c0_2] : memref<3x256xf32, #tpu.memory_space<vmem>>, vector<1x256xf32>
    %c0_3 = arith.constant 0 : index
    %c0_4 = arith.constant 0 : index
    %c0_5 = arith.constant 0 : index
    %3 = vector.load %arg3[%c0_3, %c0_4, %c0_5] : memref<2x8x3xf32, #tpu.memory_space<vmem>>, vector<1x8x3xf32>
    %4 = vector.shape_cast %3 : vector<1x8x3xf32> to vector<8x3xf32>
    %5 = vector.extract_strided_slice %4 {offsets = [0, 0], sizes = [8, 1], strides = [1, 1]} : vector<8x3xf32> to vector<8x1xf32>
    %6 = vector.broadcast %5 : vector<8x1xf32> to vector<8x256xf32>
    %7 = vector.broadcast %0 : vector<1x256xf32> to vector<8x256xf32>
    %8 = arith.mulf %6, %7 : vector<8x256xf32>
    %9 = vector.extract_strided_slice %4 {offsets = [0, 1], sizes = [8, 1], strides = [1, 1]} : vector<8x3xf32> to vector<8x1xf32>
    %10 = vector.broadcast %9 : vector<8x1xf32> to vector<8x256xf32>
    %11 = vector.broadcast %1 : vector<1x256xf32> to vector<8x256xf32>
    %12 = arith.mulf %10, %11 : vector<8x256xf32>
    %13 = arith.addf %8, %12 : vector<8x256xf32>
    %14 = vector.extract_strided_slice %4 {offsets = [0, 2], sizes = [8, 1], strides = [1, 1]} : vector<8x3xf32> to vector<8x1xf32>
    %15 = vector.broadcast %14 : vector<8x1xf32> to vector<8x256xf32>
    %16 = vector.broadcast %2 : vector<1x256xf32> to vector<8x256xf32>
    %17 = arith.mulf %15, %16 : vector<8x256xf32>
    %18 = arith.addf %13, %17 : vector<8x256xf32>
    %19 = math.sin %18 : vector<8x256xf32>
    %20 = math.cos %18 : vector<8x256xf32>
    %c0_6 = arith.constant 0 : index
    %c0_7 = arith.constant 0 : index
    %21 = vector.load %arg5[%c0_6, %c0_7] : memref<32x8xbf16, #tpu.memory_space<vmem>>, vector<32x8xbf16>
    %22 = arith.truncf %19 : vector<8x256xf32> to vector<8x256xbf16>
    %cst = arith.constant dense<0.000000e+00> : vector<32x256xf32>
    %23 = tpu.matmul %21, %22, %cst {dimension_numbers = #tpu.dot_dimension_numbers<[1], [0], [0], [1], [0, 0, 1, 1], [], []>} : vector<32x8xbf16>, vector<8x256xbf16>, vector<32x256xf32> -> vector<32x256xf32>
    %c0_8 = arith.constant 0 : index
    %c0_9 = arith.constant 0 : index
    %24 = vector.load %arg6[%c0_8, %c0_9] : memref<32x8xbf16, #tpu.memory_space<vmem>>, vector<32x8xbf16>
    %25 = arith.truncf %20 : vector<8x256xf32> to vector<8x256xbf16>
    %cst_10 = arith.constant dense<0.000000e+00> : vector<32x256xf32>
    %26 = tpu.matmul %24, %25, %cst_10 {dimension_numbers = #tpu.dot_dimension_numbers<[1], [0], [0], [1], [0, 0, 1, 1], [], []>} : vector<32x8xbf16>, vector<8x256xbf16>, vector<32x256xf32> -> vector<32x256xf32>
    %27 = arith.addf %23, %26 : vector<32x256xf32>
    %c0_11 = arith.constant 0 : index
    %c0_12 = arith.constant 0 : index
    %c0_13 = arith.constant 0 : index
    %28 = vector.load %arg4[%c0_11, %c0_12, %c0_13] : memref<2x32x1xf32, #tpu.memory_space<vmem>>, vector<1x32x1xf32>
    %29 = vector.shape_cast %28 : vector<1x32x1xf32> to vector<32x1xf32>
    %30 = vector.broadcast %29 : vector<32x1xf32> to vector<32x256xf32>
    %31 = arith.addf %27, %30 : vector<32x256xf32>
    %cst_14 = arith.constant 0.000000e+00 : f32
    %32 = vector.broadcast %cst_14 : f32 to vector<32x256xf32>
    %33 = arith.maximumf %31, %32 : vector<32x256xf32>
    %c0_15 = arith.constant 0 : index
    %c0_16 = arith.constant 0 : index
    %34 = vector.load %arg7[%c0_15, %c0_16] : memref<32x32xbf16, #tpu.memory_space<vmem>>, vector<32x32xbf16>
    %35 = arith.truncf %33 : vector<32x256xf32> to vector<32x256xbf16>
    %cst_17 = arith.constant dense<0.000000e+00> : vector<32x256xf32>
    %36 = tpu.matmul %34, %35, %cst_17 {dimension_numbers = #tpu.dot_dimension_numbers<[1], [0], [0], [1], [0, 0, 1, 1], [], []>} : vector<32x32xbf16>, vector<32x256xbf16>, vector<32x256xf32> -> vector<32x256xf32>
    %c0_18 = arith.constant 0 : index
    %c0_19 = arith.constant 0 : index
    %37 = vector.load %arg8[%c0_18, %c0_19] : memref<32x1xf32, #tpu.memory_space<vmem>>, vector<32x1xf32>
    %38 = vector.broadcast %37 : vector<32x1xf32> to vector<32x256xf32>
    %39 = arith.addf %36, %38 : vector<32x256xf32>
    %cst_20 = arith.constant 0.000000e+00 : f32
    %40 = vector.broadcast %cst_20 : f32 to vector<32x256xf32>
    %41 = arith.maximumf %39, %40 : vector<32x256xf32>
    %c0_21 = arith.constant 0 : index
    %c0_22 = arith.constant 0 : index
    %42 = vector.load %arg9[%c0_21, %c0_22] : memref<2x32xbf16, #tpu.memory_space<vmem>>, vector<2x32xbf16>
    %43 = arith.truncf %41 : vector<32x256xf32> to vector<32x256xbf16>
    %cst_23 = arith.constant dense<0.000000e+00> : vector<2x256xf32>
    %44 = tpu.matmul %42, %43, %cst_23 {dimension_numbers = #tpu.dot_dimension_numbers<[1], [0], [0], [1], [0, 0, 1, 1], [], []>} : vector<2x32xbf16>, vector<32x256xbf16>, vector<2x256xf32> -> vector<2x256xf32>
    %c0_24 = arith.constant 0 : index
    %c0_25 = arith.constant 0 : index
    %45 = vector.load %arg10[%c0_24, %c0_25] : memref<2x1xf32, #tpu.memory_space<vmem>>, vector<2x1xf32>
    %46 = vector.broadcast %45 : vector<2x1xf32> to vector<2x256xf32>
    %47 = arith.addf %44, %46 : vector<2x256xf32>
    %c0_26 = arith.constant 0 : index
    %c0_27 = arith.constant 0 : index
    %c0_28 = arith.constant 0 : index
    %48 = vector.load %arg11[%c0_26, %c0_27, %c0_28] : memref<2x2x256xf32, #tpu.memory_space<vmem>>, vector<1x2x256xf32>
    %49 = vector.shape_cast %48 : vector<1x2x256xf32> to vector<2x256xf32>
    %50 = vector.shape_cast %47 : vector<2x256xf32> to vector<1x2x256xf32>
    tpu.vector_store %arg11[%c0_26, %c0_27, %c0_28], %50 {strides = array<i32>} : memref<2x2x256xf32, #tpu.memory_space<vmem>>, vector<1x2x256xf32>,
    %c1_29 = arith.constant 1 : index
    %c0_30 = arith.constant 0 : index
    %c0_31 = arith.constant 0 : index
    %51 = vector.load %arg3[%c1_29, %c0_30, %c0_31] : memref<2x8x3xf32, #tpu.memory_space<vmem>>, vector<1x8x3xf32>
    %52 = vector.shape_cast %51 : vector<1x8x3xf32> to vector<8x3xf32>
    %53 = vector.extract_strided_slice %52 {offsets = [0, 0], sizes = [8, 1], strides = [1, 1]} : vector<8x3xf32> to vector<8x1xf32>
    %54 = vector.broadcast %53 : vector<8x1xf32> to vector<8x256xf32>
    %55 = vector.broadcast %0 : vector<1x256xf32> to vector<8x256xf32>
    %56 = arith.mulf %54, %55 : vector<8x256xf32>
    %57 = vector.extract_strided_slice %52 {offsets = [0, 1], sizes = [8, 1], strides = [1, 1]} : vector<8x3xf32> to vector<8x1xf32>
    %58 = vector.broadcast %57 : vector<8x1xf32> to vector<8x256xf32>
    %59 = vector.broadcast %1 : vector<1x256xf32> to vector<8x256xf32>
    %60 = arith.mulf %58, %59 : vector<8x256xf32>
    %61 = arith.addf %56, %60 : vector<8x256xf32>
    %62 = vector.extract_strided_slice %52 {offsets = [0, 2], sizes = [8, 1], strides = [1, 1]} : vector<8x3xf32> to vector<8x1xf32>
    %63 = vector.broadcast %62 : vector<8x1xf32> to vector<8x256xf32>
    %64 = vector.broadcast %2 : vector<1x256xf32> to vector<8x256xf32>
    %65 = arith.mulf %63, %64 : vector<8x256xf32>
    %66 = arith.addf %61, %65 : vector<8x256xf32>
    %67 = math.sin %66 : vector<8x256xf32>
    %68 = math.cos %66 : vector<8x256xf32>
    %c0_32 = arith.constant 0 : index
    %c0_33 = arith.constant 0 : index
    %69 = vector.load %arg5[%c0_32, %c0_33] : memref<32x8xbf16, #tpu.memory_space<vmem>>, vector<32x8xbf16>
    %70 = arith.truncf %67 : vector<8x256xf32> to vector<8x256xbf16>
    %cst_34 = arith.constant dense<0.000000e+00> : vector<32x256xf32>
    %71 = tpu.matmul %69, %70, %cst_34 {dimension_numbers = #tpu.dot_dimension_numbers<[1], [0], [0], [1], [0, 0, 1, 1], [], []>} : vector<32x8xbf16>, vector<8x256xbf16>, vector<32x256xf32> -> vector<32x256xf32>
    %c0_35 = arith.constant 0 : index
    %c0_36 = arith.constant 0 : index
    %72 = vector.load %arg6[%c0_35, %c0_36] : memref<32x8xbf16, #tpu.memory_space<vmem>>, vector<32x8xbf16>
    %73 = arith.truncf %68 : vector<8x256xf32> to vector<8x256xbf16>
    %cst_37 = arith.constant dense<0.000000e+00> : vector<32x256xf32>
    %74 = tpu.matmul %72, %73, %cst_37 {dimension_numbers = #tpu.dot_dimension_numbers<[1], [0], [0], [1], [0, 0, 1, 1], [], []>} : vector<32x8xbf16>, vector<8x256xbf16>, vector<32x256xf32> -> vector<32x256xf32>
    %75 = arith.addf %71, %74 : vector<32x256xf32>
    %c1_38 = arith.constant 1 : index
    %c0_39 = arith.constant 0 : index
    %c0_40 = arith.constant 0 : index
    %76 = vector.load %arg4[%c1_38, %c0_39, %c0_40] : memref<2x32x1xf32, #tpu.memory_space<vmem>>, vector<1x32x1xf32>
    %77 = vector.shape_cast %76 : vector<1x32x1xf32> to vector<32x1xf32>
    %78 = vector.broadcast %77 : vector<32x1xf32> to vector<32x256xf32>
    %79 = arith.addf %75, %78 : vector<32x256xf32>
    %cst_41 = arith.constant 0.000000e+00 : f32
    %80 = vector.broadcast %cst_41 : f32 to vector<32x256xf32>
    %81 = arith.maximumf %79, %80 : vector<32x256xf32>
    %c0_42 = arith.constant 0 : index
    %c0_43 = arith.constant 0 : index
    %82 = vector.load %arg7[%c0_42, %c0_43] : memref<32x32xbf16, #tpu.memory_space<vmem>>, vector<32x32xbf16>
    %83 = arith.truncf %81 : vector<32x256xf32> to vector<32x256xbf16>
    %cst_44 = arith.constant dense<0.000000e+00> : vector<32x256xf32>
    %84 = tpu.matmul %82, %83, %cst_44 {dimension_numbers = #tpu.dot_dimension_numbers<[1], [0], [0], [1], [0, 0, 1, 1], [], []>} : vector<32x32xbf16>, vector<32x256xbf16>, vector<32x256xf32> -> vector<32x256xf32>
    %c0_45 = arith.constant 0 : index
    %c0_46 = arith.constant 0 : index
    %85 = vector.load %arg8[%c0_45, %c0_46] : memref<32x1xf32, #tpu.memory_space<vmem>>, vector<32x1xf32>
    %86 = vector.broadcast %85 : vector<32x1xf32> to vector<32x256xf32>
    %87 = arith.addf %84, %86 : vector<32x256xf32>
    %cst_47 = arith.constant 0.000000e+00 : f32
    %88 = vector.broadcast %cst_47 : f32 to vector<32x256xf32>
    %89 = arith.maximumf %87, %88 : vector<32x256xf32>
    %c0_48 = arith.constant 0 : index
    %c0_49 = arith.constant 0 : index
    %90 = vector.load %arg9[%c0_48, %c0_49] : memref<2x32xbf16, #tpu.memory_space<vmem>>, vector<2x32xbf16>
    %91 = arith.truncf %89 : vector<32x256xf32> to vector<32x256xbf16>
    %cst_50 = arith.constant dense<0.000000e+00> : vector<2x256xf32>
    %92 = tpu.matmul %90, %91, %cst_50 {dimension_numbers = #tpu.dot_dimension_numbers<[1], [0], [0], [1], [0, 0, 1, 1], [], []>} : vector<2x32xbf16>, vector<32x256xbf16>, vector<2x256xf32> -> vector<2x256xf32>
    %c0_51 = arith.constant 0 : index
    %c0_52 = arith.constant 0 : index
    %93 = vector.load %arg10[%c0_51, %c0_52] : memref<2x1xf32, #tpu.memory_space<vmem>>, vector<2x1xf32>
    %94 = vector.broadcast %93 : vector<2x1xf32> to vector<2x256xf32>
    %95 = arith.addf %92, %94 : vector<2x256xf32>
    %c1_53 = arith.constant 1 : index
    %c0_54 = arith.constant 0 : index
    %c0_55 = arith.constant 0 : index
    %96 = vector.load %arg11[%c1_53, %c0_54, %c0_55] : memref<2x2x256xf32, #tpu.memory_space<vmem>>, vector<1x2x256xf32>
    %97 = vector.shape_cast %96 : vector<1x2x256xf32> to vector<2x256xf32>
    %98 = vector.shape_cast %95 : vector<2x256xf32> to vector<1x2x256xf32>
    tpu.vector_store %arg11[%c1_53, %c0_54, %c0_55], %98 {strides = array<i32>} : memref<2x2x256xf32, #tpu.memory_space<vmem>>, vector<1x2x256xf32>,
    return
  }
  func.func @transform_0(%arg0: i32, %arg1: i32) -> (i32, i32) {
    %c0_i32 = arith.constant 0 : i32
    %c0_i32_0 = arith.constant 0 : i32
    return %c0_i32, %arg0 : i32, i32
  }
  func.func @transform_1(%arg0: i32, %arg1: i32) -> (i32, i32, i32) {
    %c0_i32 = arith.constant 0 : i32
    %c0_i32_0 = arith.constant 0 : i32
    %c0_i32_1 = arith.constant 0 : i32
    return %arg1, %c0_i32, %c0_i32_0 : i32, i32, i32
  }
  func.func @transform_2(%arg0: i32, %arg1: i32) -> (i32, i32, i32) {
    %c0_i32 = arith.constant 0 : i32
    %c0_i32_0 = arith.constant 0 : i32
    %c0_i32_1 = arith.constant 0 : i32
    return %arg1, %c0_i32, %c0_i32_0 : i32, i32, i32
  }
  func.func @transform_3(%arg0: i32, %arg1: i32) -> (i32, i32) {
    %c0_i32 = arith.constant 0 : i32
    %c0_i32_0 = arith.constant 0 : i32
    %c0_i32_1 = arith.constant 0 : i32
    return %c0_i32, %c0_i32_0 : i32, i32
  }
  func.func @transform_4(%arg0: i32, %arg1: i32) -> (i32, i32) {
    %c0_i32 = arith.constant 0 : i32
    %c0_i32_0 = arith.constant 0 : i32
    %c0_i32_1 = arith.constant 0 : i32
    return %c0_i32, %c0_i32_0 : i32, i32
  }
  func.func @transform_5(%arg0: i32, %arg1: i32) -> (i32, i32) {
    %c0_i32 = arith.constant 0 : i32
    %c0_i32_0 = arith.constant 0 : i32
    %c0_i32_1 = arith.constant 0 : i32
    return %c0_i32, %c0_i32_0 : i32, i32
  }
  func.func @transform_6(%arg0: i32, %arg1: i32) -> (i32, i32) {
    %c0_i32 = arith.constant 0 : i32
    %c0_i32_0 = arith.constant 0 : i32
    %c0_i32_1 = arith.constant 0 : i32
    return %c0_i32, %c0_i32_0 : i32, i32
  }
  func.func @transform_7(%arg0: i32, %arg1: i32) -> (i32, i32) {
    %c0_i32 = arith.constant 0 : i32
    %c0_i32_0 = arith.constant 0 : i32
    %c0_i32_1 = arith.constant 0 : i32
    return %c0_i32, %c0_i32_0 : i32, i32
  }
  func.func @transform_8(%arg0: i32, %arg1: i32) -> (i32, i32) {
    %c0_i32 = arith.constant 0 : i32
    %c0_i32_0 = arith.constant 0 : i32
    %c0_i32_1 = arith.constant 0 : i32
    return %c0_i32, %c0_i32_0 : i32, i32
  }
  func.func @transform_9(%arg0: i32, %arg1: i32) -> (i32, i32, i32) {
    %c0_i32 = arith.constant 0 : i32
    %c0_i32_0 = arith.constant 0 : i32
    return %arg1, %c0_i32, %arg0 : i32, i32, i32
  }
}

module attributes {stable_mosaic.version = 11 : i64} {
  func.func @_fourier_slice_kernel(%arg0: i32, %arg1: i32, %arg2: memref<3x256xf32, #tpu.memory_space<vmem>>, %arg3: memref<2x8x3xf32, #tpu.memory_space<vmem>>, %arg4: memref<2x32x1xf32, #tpu.memory_space<vmem>>, %arg5: memref<32x8xbf16, #tpu.memory_space<vmem>>, %arg6: memref<32x8xbf16, #tpu.memory_space<vmem>>, %arg7: memref<32x32xbf16, #tpu.memory_space<vmem>>, %arg8: memref<32x1xf32, #tpu.memory_space<vmem>>, %arg9: memref<2x32xbf16, #tpu.memory_space<vmem>>, %arg10: memref<2x1xf32, #tpu.memory_space<vmem>>, %arg11: memref<2x2x256xf32, #tpu.memory_space<vmem>>) attributes {dimension_semantics = [#tpu.dimension_semantics<parallel>, #tpu.dimension_semantics<parallel>], iteration_bounds = array<i64: 1, 1>, scalar_prefetch = 0 : i64, scratch_operands = 0 : i64, tpu.core_type = #tpu.core_type<tc>, window_params = [{transform_indices = @transform_0, window_bounds = array<i64: 3, 256>}, {transform_indices = @transform_1, window_bounds = array<i64: 2, 8, 3>}, {transform_indices = @transform_2, window_bounds = array<i64: 2, 32, 1>}, {pipeline_mode = #tpu.pipeline_mode<synchronous>, transform_indices = @transform_3, window_bounds = array<i64: 32, 8>}, {pipeline_mode = #tpu.pipeline_mode<synchronous>, transform_indices = @transform_4, window_bounds = array<i64: 32, 8>}, {pipeline_mode = #tpu.pipeline_mode<synchronous>, transform_indices = @transform_5, window_bounds = array<i64: 32, 32>}, {pipeline_mode = #tpu.pipeline_mode<synchronous>, transform_indices = @transform_6, window_bounds = array<i64: 32, 1>}, {pipeline_mode = #tpu.pipeline_mode<synchronous>, transform_indices = @transform_7, window_bounds = array<i64: 2, 32>}, {pipeline_mode = #tpu.pipeline_mode<synchronous>, transform_indices = @transform_8, window_bounds = array<i64: 2, 1>}, {transform_indices = @transform_9, window_bounds = array<i64: 2, 2, 256>}]} {
    %c0 = arith.constant 0 : index
    %c0_0 = arith.constant 0 : index
    %0 = vector.load %arg2[%c0, %c0_0] : memref<3x256xf32, #tpu.memory_space<vmem>>, vector<1x256xf32>
    %c1 = arith.constant 1 : index
    %c0_1 = arith.constant 0 : index
    %1 = vector.load %arg2[%c1, %c0_1] : memref<3x256xf32, #tpu.memory_space<vmem>>, vector<1x256xf32>
    %c2 = arith.constant 2 : index
    %c0_2 = arith.constant 0 : index
    %2 = vector.load %arg2[%c2, %c0_2] : memref<3x256xf32, #tpu.memory_space<vmem>>, vector<1x256xf32>
    %c0_3 = arith.constant 0 : index
    %c0_4 = arith.constant 0 : index
    %c0_5 = arith.constant 0 : index
    %3 = vector.load %arg3[%c0_3, %c0_4, %c0_5] : memref<2x8x3xf32, #tpu.memory_space<vmem>>, vector<1x8x3xf32>
    %4 = vector.shape_cast %3 : vector<1x8x3xf32> to vector<8x3xf32>
    %5 = vector.extract_strided_slice %4 {offsets = [0, 0], sizes = [8, 1], strides = [1, 1]} : vector<8x3xf32> to vector<8x1xf32>
    %6 = vector.broadcast %5 : vector<8x1xf32> to vector<8x256xf32>
    %7 = vector.broadcast %0 : vector<1x256xf32> to vector<8x256xf32>
    %8 = arith.mulf %6, %7 : vector<8x256xf32>
    %9 = vector.extract_strided_slice %4 {offsets = [0, 1], sizes = [8, 1], strides = [1, 1]} : vector<8x3xf32> to vector<8x1xf32>
    %10 = vector.broadcast %9 : vector<8x1xf32> to vector<8x256xf32>
    %11 = vector.broadcast %1 : vector<1x256xf32> to vector<8x256xf32>
    %12 = arith.mulf %10, %11 : vector<8x256xf32>
    %13 = arith.addf %8, %12 : vector<8x256xf32>
    %14 = vector.extract_strided_slice %4 {offsets = [0, 2], sizes = [8, 1], strides = [1, 1]} : vector<8x3xf32> to vector<8x1xf32>
    %15 = vector.broadcast %14 : vector<8x1xf32> to vector<8x256xf32>
    %16 = vector.broadcast %2 : vector<1x256xf32> to vector<8x256xf32>
    %17 = arith.mulf %15, %16 : vector<8x256xf32>
    %18 = arith.addf %13, %17 : vector<8x256xf32>
    %19 = math.sin %18 : vector<8x256xf32>
    %20 = math.cos %18 : vector<8x256xf32>
    %c0_6 = arith.constant 0 : index
    %c0_7 = arith.constant 0 : index
    %21 = vector.load %arg5[%c0_6, %c0_7] : memref<32x8xbf16, #tpu.memory_space<vmem>>, vector<32x8xbf16>
    %22 = arith.truncf %19 : vector<8x256xf32> to vector<8x256xbf16>
    %cst = arith.constant dense<0.000000e+00> : vector<32x256xf32>
    %23 = tpu.matmul %21, %22, %cst {dimension_numbers = #tpu.dot_dimension_numbers<[1], [0], [0], [1], [0, 0, 1, 1], [], []>} : vector<32x8xbf16>, vector<8x256xbf16>, vector<32x256xf32> -> vector<32x256xf32>
    %c0_8 = arith.constant 0 : index
    %c0_9 = arith.constant 0 : index
    %24 = vector.load %arg6[%c0_8, %c0_9] : memref<32x8xbf16, #tpu.memory_space<vmem>>, vector<32x8xbf16>
    %25 = arith.truncf %20 : vector<8x256xf32> to vector<8x256xbf16>
    %cst_10 = arith.constant dense<0.000000e+00> : vector<32x256xf32>
    %26 = tpu.matmul %24, %25, %cst_10 {dimension_numbers = #tpu.dot_dimension_numbers<[1], [0], [0], [1], [0, 0, 1, 1], [], []>} : vector<32x8xbf16>, vector<8x256xbf16>, vector<32x256xf32> -> vector<32x256xf32>
    %27 = arith.addf %23, %26 : vector<32x256xf32>
    %c0_11 = arith.constant 0 : index
    %c0_12 = arith.constant 0 : index
    %c0_13 = arith.constant 0 : index
    %28 = vector.load %arg4[%c0_11, %c0_12, %c0_13] : memref<2x32x1xf32, #tpu.memory_space<vmem>>, vector<1x32x1xf32>
    %29 = vector.shape_cast %28 : vector<1x32x1xf32> to vector<32x1xf32>
    %30 = vector.broadcast %29 : vector<32x1xf32> to vector<32x256xf32>
    %31 = arith.addf %27, %30 : vector<32x256xf32>
    %cst_14 = arith.constant 0.000000e+00 : f32
    %32 = vector.broadcast %cst_14 : f32 to vector<32x256xf32>
    %33 = arith.maximumf %31, %32 : vector<32x256xf32>
    %c0_15 = arith.constant 0 : index
    %c0_16 = arith.constant 0 : index
    %34 = vector.load %arg7[%c0_15, %c0_16] : memref<32x32xbf16, #tpu.memory_space<vmem>>, vector<32x32xbf16>
    %35 = arith.truncf %33 : vector<32x256xf32> to vector<32x256xbf16>
    %cst_17 = arith.constant dense<0.000000e+00> : vector<32x256xf32>
    %36 = tpu.matmul %34, %35, %cst_17 {dimension_numbers = #tpu.dot_dimension_numbers<[1], [0], [0], [1], [0, 0, 1, 1], [], []>} : vector<32x32xbf16>, vector<32x256xbf16>, vector<32x256xf32> -> vector<32x256xf32>
    %c0_18 = arith.constant 0 : index
    %c0_19 = arith.constant 0 : index
    %37 = vector.load %arg8[%c0_18, %c0_19] : memref<32x1xf32, #tpu.memory_space<vmem>>, vector<32x1xf32>
    %38 = vector.broadcast %37 : vector<32x1xf32> to vector<32x256xf32>
    %39 = arith.addf %36, %38 : vector<32x256xf32>
    %cst_20 = arith.constant 0.000000e+00 : f32
    %40 = vector.broadcast %cst_20 : f32 to vector<32x256xf32>
    %41 = arith.maximumf %39, %40 : vector<32x256xf32>
    %c0_21 = arith.constant 0 : index
    %c0_22 = arith.constant 0 : index
    %42 = vector.load %arg9[%c0_21, %c0_22] : memref<2x32xbf16, #tpu.memory_space<vmem>>, vector<2x32xbf16>
    %43 = arith.truncf %41 : vector<32x256xf32> to vector<32x256xbf16>
    %cst_23 = arith.constant dense<0.000000e+00> : vector<2x256xf32>
    %44 = tpu.matmul %42, %43, %cst_23 {dimension_numbers = #tpu.dot_dimension_numbers<[1], [0], [0], [1], [0, 0, 1, 1], [], []>} : vector<2x32xbf16>, vector<32x256xbf16>, vector<2x256xf32> -> vector<2x256xf32>
    %c0_24 = arith.constant 0 : index
    %c0_25 = arith.constant 0 : index
    %45 = vector.load %arg10[%c0_24, %c0_25] : memref<2x1xf32, #tpu.memory_space<vmem>>, vector<2x1xf32>
    %46 = vector.broadcast %45 : vector<2x1xf32> to vector<2x256xf32>
    %47 = arith.addf %44, %46 : vector<2x256xf32>
    %c0_26 = arith.constant 0 : index
    %c0_27 = arith.constant 0 : index
    %c0_28 = arith.constant 0 : index
    %48 = vector.load %arg11[%c0_26, %c0_27, %c0_28] : memref<2x2x256xf32, #tpu.memory_space<vmem>>, vector<1x2x256xf32>
    %49 = vector.shape_cast %48 : vector<1x2x256xf32> to vector<2x256xf32>
    %50 = vector.shape_cast %47 : vector<2x256xf32> to vector<1x2x256xf32>
    tpu.vector_store %arg11[%c0_26, %c0_27, %c0_28], %50 {strides = array<i32>} : memref<2x2x256xf32, #tpu.memory_space<vmem>>, vector<1x2x256xf32>,
    %c1_29 = arith.constant 1 : index
    %c0_30 = arith.constant 0 : index
    %c0_31 = arith.constant 0 : index
    %51 = vector.load %arg3[%c1_29, %c0_30, %c0_31] : memref<2x8x3xf32, #tpu.memory_space<vmem>>, vector<1x8x3xf32>
    %52 = vector.shape_cast %51 : vector<1x8x3xf32> to vector<8x3xf32>
    %53 = vector.extract_strided_slice %52 {offsets = [0, 0], sizes = [8, 1], strides = [1, 1]} : vector<8x3xf32> to vector<8x1xf32>
    %54 = vector.broadcast %53 : vector<8x1xf32> to vector<8x256xf32>
    %55 = vector.broadcast %0 : vector<1x256xf32> to vector<8x256xf32>
    %56 = arith.mulf %54, %55 : vector<8x256xf32>
    %57 = vector.extract_strided_slice %52 {offsets = [0, 1], sizes = [8, 1], strides = [1, 1]} : vector<8x3xf32> to vector<8x1xf32>
    %58 = vector.broadcast %57 : vector<8x1xf32> to vector<8x256xf32>
    %59 = vector.broadcast %1 : vector<1x256xf32> to vector<8x256xf32>
    %60 = arith.mulf %58, %59 : vector<8x256xf32>
    %61 = arith.addf %56, %60 : vector<8x256xf32>
    %62 = vector.extract_strided_slice %52 {offsets = [0, 2], sizes = [8, 1], strides = [1, 1]} : vector<8x3xf32> to vector<8x1xf32>
    %63 = vector.broadcast %62 : vector<8x1xf32> to vector<8x256xf32>
    %64 = vector.broadcast %2 : vector<1x256xf32> to vector<8x256xf32>
    %65 = arith.mulf %63, %64 : vector<8x256xf32>
    %66 = arith.addf %61, %65 : vector<8x256xf32>
    %67 = math.sin %66 : vector<8x256xf32>
    %68 = math.cos %66 : vector<8x256xf32>
    %c0_32 = arith.constant 0 : index
    %c0_33 = arith.constant 0 : index
    %69 = vector.load %arg5[%c0_32, %c0_33] : memref<32x8xbf16, #tpu.memory_space<vmem>>, vector<32x8xbf16>
    %70 = arith.truncf %67 : vector<8x256xf32> to vector<8x256xbf16>
    %cst_34 = arith.constant dense<0.000000e+00> : vector<32x256xf32>
    %71 = tpu.matmul %69, %70, %cst_34 {dimension_numbers = #tpu.dot_dimension_numbers<[1], [0], [0], [1], [0, 0, 1, 1], [], []>} : vector<32x8xbf16>, vector<8x256xbf16>, vector<32x256xf32> -> vector<32x256xf32>
    %c0_35 = arith.constant 0 : index
    %c0_36 = arith.constant 0 : index
    %72 = vector.load %arg6[%c0_35, %c0_36] : memref<32x8xbf16, #tpu.memory_space<vmem>>, vector<32x8xbf16>
    %73 = arith.truncf %68 : vector<8x256xf32> to vector<8x256xbf16>
    %cst_37 = arith.constant dense<0.000000e+00> : vector<32x256xf32>
    %74 = tpu.matmul %72, %73, %cst_37 {dimension_numbers = #tpu.dot_dimension_numbers<[1], [0], [0], [1], [0, 0, 1, 1], [], []>} : vector<32x8xbf16>, vector<8x256xbf16>, vector<32x256xf32> -> vector<32x256xf32>
    %75 = arith.addf %71, %74 : vector<32x256xf32>
    %c1_38 = arith.constant 1 : index
    %c0_39 = arith.constant 0 : index
    %c0_40 = arith.constant 0 : index
    %76 = vector.load %arg4[%c1_38, %c0_39, %c0_40] : memref<2x32x1xf32, #tpu.memory_space<vmem>>, vector<1x32x1xf32>
    %77 = vector.shape_cast %76 : vector<1x32x1xf32> to vector<32x1xf32>
    %78 = vector.broadcast %77 : vector<32x1xf32> to vector<32x256xf32>
    %79 = arith.addf %75, %78 : vector<32x256xf32>
    %cst_41 = arith.constant 0.000000e+00 : f32
    %80 = vector.broadcast %cst_41 : f32 to vector<32x256xf32>
    %81 = arith.maximumf %79, %80 : vector<32x256xf32>
    %c0_42 = arith.constant 0 : index
    %c0_43 = arith.constant 0 : index
    %82 = vector.load %arg7[%c0_42, %c0_43] : memref<32x32xbf16, #tpu.memory_space<vmem>>, vector<32x32xbf16>
    %83 = arith.truncf %81 : vector<32x256xf32> to vector<32x256xbf16>
    %cst_44 = arith.constant dense<0.000000e+00> : vector<32x256xf32>
    %84 = tpu.matmul %82, %83, %cst_44 {dimension_numbers = #tpu.dot_dimension_numbers<[1], [0], [0], [1], [0, 0, 1, 1], [], []>} : vector<32x32xbf16>, vector<32x256xbf16>, vector<32x256xf32> -> vector<32x256xf32>
    %c0_45 = arith.constant 0 : index
    %c0_46 = arith.constant 0 : index
    %85 = vector.load %arg8[%c0_45, %c0_46] : memref<32x1xf32, #tpu.memory_space<vmem>>, vector<32x1xf32>
    %86 = vector.broadcast %85 : vector<32x1xf32> to vector<32x256xf32>
    %87 = arith.addf %84, %86 : vector<32x256xf32>
    %cst_47 = arith.constant 0.000000e+00 : f32
    %88 = vector.broadcast %cst_47 : f32 to vector<32x256xf32>
    %89 = arith.maximumf %87, %88 : vector<32x256xf32>
    %c0_48 = arith.constant 0 : index
    %c0_49 = arith.constant 0 : index
    %90 = vector.load %arg9[%c0_48, %c0_49] : memref<2x32xbf16, #tpu.memory_space<vmem>>, vector<2x32xbf16>
    %91 = arith.truncf %89 : vector<32x256xf32> to vector<32x256xbf16>
    %cst_50 = arith.constant dense<0.000000e+00> : vector<2x256xf32>
    %92 = tpu.matmul %90, %91, %cst_50 {dimension_numbers = #tpu.dot_dimension_numbers<[1], [0], [0], [1], [0, 0, 1, 1], [], []>} : vector<2x32xbf16>, vector<32x256xbf16>, vector<2x256xf32> -> vector<2x256xf32>
    %c0_51 = arith.constant 0 : index
    %c0_52 = arith.constant 0 : index
    %93 = vector.load %arg10[%c0_51, %c0_52] : memref<2x1xf32, #tpu.memory_space<vmem>>, vector<2x1xf32>
    %94 = vector.broadcast %93 : vector<2x1xf32> to vector<2x256xf32>
    %95 = arith.addf %92, %94 : vector<2x256xf32>
    %c1_53 = arith.constant 1 : index
    %c0_54 = arith.constant 0 : index
    %c0_55 = arith.constant 0 : index
    %96 = vector.load %arg11[%c1_53, %c0_54, %c0_55] : memref<2x2x256xf32, #tpu.memory_space<vmem>>, vector<1x2x256xf32>
    %97 = vector.shape_cast %96 : vector<1x2x256xf32> to vector<2x256xf32>
    %98 = vector.shape_cast %95 : vector<2x256xf32> to vector<1x2x256xf32>
    tpu.vector_store %arg11[%c1_53, %c0_54, %c0_55], %98 {strides = array<i32>} : memref<2x2x256xf32, #tpu.memory_space<vmem>>, vector<1x2x256xf32>,
    return
  }
  func.func @transform_0(%arg0: i32, %arg1: i32) -> (i32, i32) {
    %c0_i32 = arith.constant 0 : i32
    %c0_i32_0 = arith.constant 0 : i32
    return %c0_i32, %arg0 : i32, i32
  }
  func.func @transform_1(%arg0: i32, %arg1: i32) -> (i32, i32, i32) {
    %c0_i32 = arith.constant 0 : i32
    %c0_i32_0 = arith.constant 0 : i32
    %c0_i32_1 = arith.constant 0 : i32
    return %arg1, %c0_i32, %c0_i32_0 : i32, i32, i32
  }
  func.func @transform_2(%arg0: i32, %arg1: i32) -> (i32, i32, i32) {
    %c0_i32 = arith.constant 0 : i32
    %c0_i32_0 = arith.constant 0 : i32
    %c0_i32_1 = arith.constant 0 : i32
    return %arg1, %c0_i32, %c0_i32_0 : i32, i32, i32
  }
  func.func @transform_3(%arg0: i32, %arg1: i32) -> (i32, i32) {
    %c0_i32 = arith.constant 0 : i32
    %c0_i32_0 = arith.constant 0 : i32
    %c0_i32_1 = arith.constant 0 : i32
    return %c0_i32, %c0_i32_0 : i32, i32
  }
  func.func @transform_4(%arg0: i32, %arg1: i32) -> (i32, i32) {
    %c0_i32 = arith.constant 0 : i32
    %c0_i32_0 = arith.constant 0 : i32
    %c0_i32_1 = arith.constant 0 : i32
    return %c0_i32, %c0_i32_0 : i32, i32
  }
  func.func @transform_5(%arg0: i32, %arg1: i32) -> (i32, i32) {
    %c0_i32 = arith.constant 0 : i32
    %c0_i32_0 = arith.constant 0 : i32
    %c0_i32_1 = arith.constant 0 : i32
    return %c0_i32, %c0_i32_0 : i32, i32
  }
  func.func @transform_6(%arg0: i32, %arg1: i32) -> (i32, i32) {
    %c0_i32 = arith.constant 0 : i32
    %c0_i32_0 = arith.constant 0 : i32
    %c0_i32_1 = arith.constant 0 : i32
    return %c0_i32, %c0_i32_0 : i32, i32
  }
  func.func @transform_7(%arg0: i32, %arg1: i32) -> (i32, i32) {
    %c0_i32 = arith.constant 0 : i32
    %c0_i32_0 = arith.constant 0 : i32
    %c0_i32_1 = arith.constant 0 : i32
    return %c0_i32, %c0_i32_0 : i32, i32
  }
  func.func @transform_8(%arg0: i32, %arg1: i32) -> (i32, i32) {
    %c0_i32 = arith.constant 0 : i32
    %c0_i32_0 = arith.constant 0 : i32
    %c0_i32_1 = arith.constant 0 : i32
    return %c0_i32, %c0_i32_0 : i32, i32
  }
  func.func @transform_9(%arg0: i32, %arg1: i32) -> (i32, i32, i32) {
    %c0_i32 = arith.constant 0 : i32
    %c0_i32_0 = arith.constant 0 : i32
    return %arg1, %c0_i32, %arg0 : i32, i32, i32
  }
}

</mosaic_0001>

<bundles_post_ra>
// kernel: tpu_custom_call.1
= control target key start
LH: loop header
LB: loop body
LE: loop exit
PB: predicated region body
PF: predicated region fallthrough
CT: control target
= control target key end

     0   :  { %v1902_v1 = vmov 0   ;;  %v1903_v2 = vmov 2   ;;  %v1904_v3 = vmov 1   ;;  %s2414_s0 = inlined_call_operand.vmem [shape: f32[3,256], index: 0, kind: input, shape index: {}]   ;;  %s2415_s1 = inlined_call_operand.vmem [shape: f32[2,8,3], index: 1, kind: input, shape index: {}]   ;;  %s2416_s2 = inlined_call_operand.vmem [shape: f32[2,32,1], index: 2, kind: input, shape index: {}]   ;;  %s2417_s3 = inlined_call_operand.vmem [shape: bf16[32,8], index: 3, kind: input, shape index: {}]   ;;  %s2418_s4 = inlined_call_operand.vmem [shape: bf16[32,8], index: 4, kind: input, shape index: {}]   ;;  %s2419_s5 = inlined_call_operand.vmem [shape: bf16[32,32], index: 5, kind: input, shape index: {}]   ;;  %s2420_s6 = inlined_call_operand.vmem [shape: f32[32,1], index: 6, kind: input, shape index: {}]   ;;  %s2421_s7 = inlined_call_operand.vmem [shape: bf16[2,32], index: 7, kind: input, shape index: {}]   ;;  %s2422_s8 = inlined_call_operand.vmem [shape: f32[2,1], index: 8, kind: input, shape index: {}]   ;;  %s2423_s9 = inlined_call_operand.hbm [shape: f32[2,2,256], index: 9, kind: output, shape index: {}]  }
   0x1   :  { %v39_v0 = vld [vmem:[%s2415_s1] sm:$0xff]  ;;  %1841 = vset.pattern.permute.xlu0 %v1902_v1  ;;  %1843 = vset.pattern.permute.xlu1 %v1903_v2 }
   0x2   :  { %42 = vperm.xlu0 %1841, %v39_v0   ;;  %78 = vperm.xlu1 %1843, %v39_v0  }
   0x3   :  { %578 = vmatprep.mubr.bf16.mxu0 %v1902_v1  ;;  %795 = vmatprep.mubr.bf16.mxu1 %v1902_v1 }
   0x6   :  { %1842 = vset.pattern.permute.xlu0 %v1904_v3  ;;  %1844 = vset.pattern.permute.xlu1 %v1902_v1 }
   0x7   :  { %59 = vperm.xlu0 %1842, %v39_v0  }
   0xb   :  { %1845 = vset.pattern.permute.xlu0 %v1902_v1 }
   0xc   :  { %14 = vsyncpa [#allocation3], 0  ;;  %v46_v4 = vlaneseq  ;;  %v674_v5 = vld [vmem:[%s2416_s2] sm:$0xff]  ;;  %v675_v6 = vld [vmem:[%s2416_s2 + $0x8] sm:$0xff]  ;;  %v1905_v58 = vmov 2102212464  }
   0xd   :  { %680 = vperm.xlu1 %1844, %v674_v5   ;;  %v34_v10 = vld [vmem:[%s2414_s0] ss:$4 sm:$0x3]  ;;  %v677_v11 = vld [vmem:[%s2416_s2 + $0x18] sm:$0xff]  ;;  %v676_v12 = vld [vmem:[%s2416_s2 + $0x10] sm:$0xff]  ;;  %s1911_s23 = smov [#allocation2]  }
   0xe   :  { %v47_v7 = vshrl.u32 %v46_v4, 7  ;;  %v1726_v13 = vld [vmem:[%s2414_s0 + $0x1] ss:$4 sm:$0x3]  ;;  %690 = vperm.xlu0 %1845, %v676_v12   ;;  %v1760_v16 = vld [vmem:[%s2415_s1 + $0x8] sm:$0xff]  ;;  %s1715_s24 = sshll.u32 %s1911_s23, 4  ;;  %s1716_s24 = int_to_ptr.vmem [resolvable:$true] %s1715_s24 }
   0xf   :  { %v1727_v14 = vld [vmem:[%s2414_s0 + $0x2] ss:$4 sm:$0x3]  ;;  %v1906_v60 = vmov 920167782   ;;  %s1878_s25 = scalar_lea.vmem %s1716_s24, 128  ;;  %p1883_p1 = scmp.lt.s32.totalorder %s1716_s24, %s1716_s24 }
  0x10   :  { %v48_v8 = vsub.s32 0, %v47_v7  ;;  %v52_v9 = vsub.s32 1, %v47_v7  ;;  %v1907_v63 = vmov 683565275   ;;  %v1909_v5 = vmov 2475754826   ;;  %p1879_p0 = scmp.ne.s32.totalorder %s1716_s24, %s1878_s25  ;;  %p1884_p2 = scmp.lt.s32.totalorder %s1878_s25, %s1878_s25 }
  0x11   :  { %685 = vperm.xlu1 %1844, %v675_v6   ;;  %v1910_v7 = vmov 2131351028  }
  0x12   :  { %v1996_v17 = vrot.slane %v34_v10, %v48_v8  ;;  %v1998_v18 = vrot.slane %v34_v10, %v52_v9  ;;  %v2000_v19 = vrot.slane %v1726_v13, %v48_v8  ;;  %v2002_v20 = vrot.slane %v1726_v13, %v52_v9  ;;  %1846 = vset.pattern.permute.xlu0 %v1904_v3  ;;  %p1885_p3 = por %p1884_p2, %p1883_p1 }
  0x13   :  { %v2004_v21 = vrot.slane %v1727_v14, %v48_v8  ;;  %v2006_v22 = vrot.slane %v1727_v14, %v52_v9  ;;  %901 = vperm.xlu0 %1846, %v1760_v16   ;;  %v1908_v3 = vmov 1326507024  }
  0x14   :  { %p1886_p4 = pnand %p1885_p3, %p1879_p0 }
  0x15   :  { %695 = vperm.xlu1 %1844, %v677_v11  }
  0x17   :  { %1849 = vset.pattern.permute.xlu0 %v1902_v1 }
  0x19   :  { %895 = vperm.xlu1 %1844, %v1760_v16  }
  0x1d   :  { %1847 = vset.pattern.permute.xlu1 %v1903_v2 }
  0x1e   :  { %909 = vperm.xlu1 %1847, %v1760_v16  }
  0x22   :  { %1848 = vset.pattern.permute.xlu1 %v1902_v1 }
  0x81   :  { %v43_v15 = vpop.permute.xlu0 %42  ;;  %v79_v23 = vpop.permute.xlu1 %78 }
  0x82   :  { %v56_v24 = vmul.f32 %v1996_v17, %v43_v15  ;;  %v57_v25 = vmul.f32 %v1998_v18, %v43_v15  ;;  %v92_v29 = vmul.f32 %v2004_v21, %v79_v23  ;;  %v93_v30 = vmul.f32 %v2006_v22, %v79_v23 }
  0x86   :  { %v60_v26 = vpop.permute.xlu0 %59 }
  0x87   :  { %v73_v27 = vmul.f32 %v2000_v19, %v60_v26  ;;  %v74_v28 = vmul.f32 %v2002_v20, %v60_v26 }
  0x89   :  { %v75_v31 = vadd.f32 %v73_v27, %v56_v24  ;;  %v76_v32 = vadd.f32 %v74_v28, %v57_v25 }
  0x8b   :  { %v2015_v33 = vadd.f32 %v92_v29, %v75_v31  ;;  %v2017_v34 = vadd.f32 %v93_v30, %v76_v32 }
  0x8d   :  { %v99_v35 = vand.u32 2139095040, %v2015_v33  ;;  %v203_v36 = vand.u32 2139095040, %v2017_v34  ;;  %v200_v37 = vand.u32 2147483647, %v2017_v34  ;;  %v96_v38 = vand.u32 2147483647, %v2015_v33 }
  0x8e   :  { %vm202_vm14 = vcmp.lt.s32.totalorder %v2017_v34, 0 }
  0x8f   :  { %v100_v39 = vshrl.u32 %v99_v35, 23  ;;  %v204_v40 = vshrl.u32 %v203_v36, 23  ;;  %v207_v41 = vand.u32 8388607, %v200_v37  ;;  %v103_v44 = vand.u32 8388607, %v96_v38 }
  0x90   :  { %vm201_vm15 = vcmp.le.f32.partialorder %v200_v37, 0.7853982 }
  0x91   :  { %v1728_v42 = vadd.s32 4294967169, %v100_v39  ;;  %v1732_v43 = vadd.s32 4294967169, %v204_v40  ;;  %v208_v47 = vor.u32 8388608, %v207_v41  ;;  %v104_v48 = vor.u32 8388608, %v103_v44 }
  0x93   :  { %v106_v45 = vadd.s32 1, %v1728_v42  ;;  %v210_v46 = vadd.s32 1, %v1732_v43  ;;  %v2028_v53 = vshll.u32 %v208_v47, 8  ;;  %v2032_v57 = vshll.u32 %v104_v48, 8 }
  0x95   :  { %vm107_vm0 = vcmp.gt.s32.totalorder %v106_v45, 0  ;;  %vm211_vm1 = vcmp.gt.s32.totalorder %v210_v46, 0 }
  0x96   :  { %v108_v49 = vsel %vm107_vm0, %v106_v45, 0  ;;  %v212_v50 = vsel %vm211_vm1, %v210_v46, 0  ;;  %vm98_vm0 = vcmp.lt.s32.totalorder %v2015_v33, 0  ;;  %vm97_vm1 = vcmp.le.f32.partialorder %v96_v38, 0.7853982 }
  0x97   :  { %v110_v51 = vand.u32 31, %v108_v49  ;;  %v214_v52 = vand.u32 31, %v212_v50  ;;  %v2030_v54 = vshrl.u32 %v108_v49, 5  ;;  %v213_v56 = vshrl.u32 %v212_v50, 5 }
  0x99   :  { %v111_v55 = vsub.s32 32, %v110_v51  ;;  %v122_v59 = vshll.u32 %v1905_v58, %v110_v51  ;;  %v125_v61 = vshll.u32 %v1906_v60, %v110_v51  ;;  %v215_v62 = vsub.s32 32, %v214_v52 }
  0x9a   :  { %v217_v0 = vshll.u32 %v1907_v63, %v214_v52  ;;  %v220_v6 = vshll.u32 %v1909_v5, %v214_v52  ;;  %v223_v8 = vshll.u32 %v1910_v7, %v214_v52  ;;  %v226_v12 = vshll.u32 %v1905_v58, %v214_v52 }
  0x9b   :  { %v123_v2 = vshrl.u32 %v1906_v60, %v111_v55  ;;  %v126_v4 = vshrl.u32 %v1908_v3, %v111_v55  ;;  %v218_v9 = vshrl.u32 %v1909_v5, %v215_v62  ;;  %v221_v10 = vshrl.u32 %v1910_v7, %v215_v62 }
  0x9c   :  { %v224_v11 = vshrl.u32 %v1905_v58, %v215_v62  ;;  %v216_v13 = vshrl.u32 %v1907_v63, %v215_v62  ;;  %v227_v14 = vshrl.u32 %v1906_v60, %v215_v62  ;;  %v229_v15 = vshll.u32 %v1906_v60, %v214_v52 }
  0x9d   :  { %v230_v16 = vshrl.u32 %v1908_v3, %v215_v62  ;;  %v124_v23 = vor.u32 %v123_v2, %v122_v59  ;;  %v219_v24 = vor.u32 %v218_v9, %v217_v0  ;;  %v222_v25 = vor.u32 %v221_v10, %v220_v6 }
  0x9e   :  { %v225_v26 = vor.u32 %v224_v11, %v223_v8  ;;  %v127_v27 = vor.u32 %v126_v4, %v125_v61  ;;  %v228_v28 = vor.u32 %v227_v14, %v226_v12  ;;  %vm232_vm2 = vcmp.lt.s32.totalorder %v213_v56, 1 }
  0x9f   :  { %v231_v29 = vor.u32 %v230_v16, %v229_v15  ;;  %vm131_vm3 = vcmp.lt.s32.totalorder %v2030_v54, 4  ;;  %vm234_vm4 = vcmp.lt.s32.totalorder %v213_v56, 3  ;;  %vm235_vm5 = vcmp.lt.s32.totalorder %v213_v56, 4 }
  0xa0   :  { %v236_v30 = vsel %vm232_vm2, %v216_v13, %v219_v24  ;;  %v237_v31 = vsel %vm235_vm5, %v225_v26, 2102212464  ;;  %v240_v32 = vsel %vm232_vm2, %v219_v24, %v222_v25  ;;  %v241_v35 = vsel %vm235_vm5, %v228_v28, 920167782 }
  0xa1   :  { %v244_v36 = vsel %vm232_vm2, %v222_v25, %v225_v26  ;;  %vm233_vm6 = vcmp.lt.s32.totalorder %v213_v56, 2  ;;  %v238_v39 = vsel %vm234_vm4, %v222_v25, %v237_v31  ;;  %v242_v40 = vsel %vm234_vm4, %v225_v26, %v241_v35 }
  0xa2   :  { %v245_v41 = vsel %vm235_vm5, %v231_v29, 1326507024  ;;  %v137_v42 = vsel %vm131_vm3, %v124_v23, 920167782  ;;  %v141_v43 = vsel %vm131_vm3, %v127_v27, 1326507024  ;;  %v243_v44 = vsel %vm233_vm6, %v240_v32, %v242_v40 }
  0xa3   :  { %v246_v45 = vsel %vm234_vm4, %v228_v28, %v245_v41  ;;  %v239_v46 = vsel %vm233_vm6, %v236_v30, %v238_v39  ;;  %v2055_v48 = vmul.u32.u64.low %v2028_v53, %v243_v44  ;;  %v2056_v49 = vmul.u32.u64.high %v2028_v53, %v243_v44, %v2055_v48 }
  0xa4   :  { %v247_v47 = vsel %vm233_vm6, %v244_v36, %v246_v45  ;;  %v113_v56 = vshll.u32 %v1907_v63, %v110_v51  ;;  %v114_v59 = vshrl.u32 %v1909_v5, %v111_v55  ;;  %v116_v61 = vshll.u32 %v1909_v5, %v110_v51 }
  0xa5   :  { %v2059_v50 = vmul.u32.u64.low %v2028_v53, %v247_v47  ;;  %v2060_v52 = vmul.u32.u64.high %v2028_v53, %v247_v47, %v2059_v50  ;;  %v117_v62 = vshrl.u32 %v1910_v7, %v111_v55  ;;  %v119_v0 = vshll.u32 %v1910_v7, %v110_v51 }
  0xa6   :  { %v120_v2 = vshrl.u32 %v1905_v58, %v111_v55  ;;  %v255_v4 = vmul.u32 %v2028_v53, %v239_v46  ;;  %v112_v6 = vshrl.u32 %v1907_v63, %v111_v55  ;;  %v115_v8 = vor.u32 %v114_v59, %v113_v56 }
  0xa7   :  { %vm128_vm7 = vcmp.lt.s32.totalorder %v2030_v54, 1  ;;  %v258_v9 = vadd.s32 1, %v2056_v49  ;;  %v118_v10 = vor.u32 %v117_v62, %v116_v61  ;;  %vm130_vm8 = vcmp.lt.s32.totalorder %v2030_v54, 3 }
  0xa8   :  { %v121_v11 = vor.u32 %v120_v2, %v119_v0  ;;  %vm257_vm9 = vc.u32 %v2060_v52, %v2055_v48  ;;  %vm129_vm10 = vcmp.lt.s32.totalorder %v2030_v54, 2  ;;  %v132_v51 = vsel %vm128_vm7, %v112_v6, %v115_v8 }
  0xa9   :  { %v142_v12 = vsel %vm130_vm8, %v124_v23, %v141_v43  ;;  %v259_v53 = vsel %vm257_vm9, %v258_v9, %v2056_v49  ;;  %v136_v13 = vsel %vm128_vm7, %v115_v8, %v118_v10  ;;  %v256_v61 = vadd.s32 %v2055_v48, %v2060_v52 }
  0xaa   :  { %v133_v55 = vsel %vm131_vm3, %v121_v11, 2102212464  ;;  %v138_v14 = vsel %vm130_vm8, %v121_v11, %v137_v42  ;;  %v260_v15 = vadd.s32 %v259_v53, %v255_v4  ;;  %v140_v25 = vsel %vm128_vm7, %v118_v10, %v121_v11 }
  0xab   :  { %v134_v16 = vsel %vm130_vm8, %v118_v10, %v133_v55  ;;  %v139_v24 = vsel %vm129_vm10, %v136_v13, %v138_v14  ;;  %v143_v26 = vsel %vm129_vm10, %v140_v25, %v142_v12  ;;  %vm292_vm5 = vweird.f32 %v2017_v34 }
  0xac   :  { %v2085_v27 = vmul.u32.u64.low %v2032_v57, %v139_v24  ;;  %v2086_v28 = vmul.u32.u64.high %v2032_v57, %v139_v24, %v2085_v27  ;;  %v261_v23 = vadd.s32 536870912, %v260_v15  ;;  %v135_v31 = vsel %vm129_vm10, %v132_v51, %v134_v16 }
  0xad   :  { %v2089_v29 = vmul.u32.u64.low %v2032_v57, %v143_v26  ;;  %v2090_v30 = vmul.u32.u64.high %v2032_v57, %v143_v26, %v2089_v29  ;;  %v151_v39 = vmul.u32 %v2032_v57, %v135_v31  ;;  %vm539_vm6 = vcmask 1043456  }
  0xae   :  { %v262_v32 = vshrl.u32 %v261_v23, 30  ;;  %v154_v35 = vadd.s32 1, %v2086_v28 }
  0xaf   :  { %vm153_vm11 = vc.u32 %v2090_v30, %v2085_v27  ;;  %v152_v13 = vadd.s32 %v2085_v27, %v2090_v30 }
  0xb0   :  { %v263_v36 = vshll.u32 %v262_v32, 30  ;;  %v155_v54 = vsel %vm153_vm11, %v154_v35, %v2086_v28  ;;  %v286_v29 = vsub.s32 4, %v262_v32 }
  0xb1   :  { %v156_v41 = vadd.s32 %v155_v54, %v151_v39 }
  0xb2   :  { %v264_v40 = vsub.s32 %v260_v15, %v263_v36  ;;  %v287_v36 = vsel %vm202_vm14, %v286_v29, %v262_v32  ;;  %v1850_v29 = vld [vmem:[%s2418_s4] sm:$0xff]  }
  0xb3   :  { %v157_v43 = vadd.s32 536870912, %v156_v41 }
  0xb4   :  { %v266_v42 = vsub.s32 0, %v264_v40 }
  0xb5   :  { %v158_v45 = vshrl.u32 %v157_v43, 30 }
  0xb6   :  { %v1733_v44 = vmin.u32 %v266_v42, %v264_v40 }
  0xb7   :  { %v159_v47 = vshll.u32 %v158_v45, 30  ;;  %v182_v54 = vsub.s32 4, %v158_v45 }
  0xb8   :  { %v268_v46 = vclz %v1733_v44 }
  0xb9   :  { %v160_v50 = vsub.s32 %v156_v41, %v159_v47  ;;  %v183_v42 = vsel %vm98_vm0, %v182_v54, %v158_v45  ;;  %v725_v54 = vld [vmem:[%s2420_s6 + $0x18] sm:$0xff] }
  0xba   :  { %v1734_v49 = vadd.s32 4294967294, %v268_v46 }
  0xbb   :  { %v162_v59 = vsub.s32 0, %v160_v50 }
  0xbc   :  { %vm1735_vm12 = vcmp.lt.s32.totalorder %v1734_v49, 0 }
  0xbd   :  { %v271_v56 = vsel %vm1735_vm12, 0, %v1734_v49  ;;  %v1729_v0 = vmin.u32 %v162_v59, %v160_v50  ;;  %v185_v49 = vsel %vm97_vm1, 0, %v183_v42  ;;  %v829_v42 = vld [vmem:[%s2422_s8] sm:$0x3] }
  0xbe   :  { %v272_v57 = vsub.s32 32, %v271_v56  ;;  %v276_v62 = vsub.s32 4294967266, %v271_v56  ;;  %v273_v2 = vshll.u32 %v264_v40, %v271_v56  ;;  %v289_v40 = vsel %vm201_vm15, 0, %v287_v36  ;;  %v724_v36 = vld [vmem:[%s2420_s6 + $0x10] sm:$0xff] }
  0xbf   :  { %v164_v8 = vclz %v1729_v0  ;;  %v500_v43 = vand.u32 3, %v289_v40  ;;  %v293_v47 = vadd.s32 3, %v289_v40  ;;  %v1789_v40 = vld [vmem:[%s2416_s2 + $0x30] sm:$0xff] }
  0xc0   :  { %v274_v4 = vshrl.u32 %v256_v61, %v272_v57  ;;  %v277_v6 = vadd.s32 127, %v276_v62  ;;  %v189_v61 = vadd.s32 3, %v185_v49 }
  0xc1   :  { %v1730_v11 = vadd.s32 4294967294, %v164_v8  ;;  %vm505_vm2 = vcmp.eq.s32.totalorder %v500_v43, 2  ;;  %vm502_vm3 = vcmp.eq.s32.totalorder %v500_v43, 0  ;;  %v294_v57 = vand.u32 3, %v293_v47 }
  0xc2   :  { %v275_v9 = vor.u32 %v274_v4, %v273_v2  ;;  %v278_v10 = vshll.u32 %v277_v6, 23  ;;  %vm501_vm4 = vcmp.lt.s32.totalorder %v500_v43, 2  ;;  %v190_v2 = vand.u32 3, %v189_v61  ;;  %v1647_v43 = vld [vmem:[%s2422_s8] sm:$0x3] }
  0xc3   :  { %vm1731_vm13 = vcmp.lt.s32.totalorder %v1730_v11, 0  ;;  %v397_v4 = vand.u32 3, %v185_v49  ;;  %vm296_vm7 = vcmp.eq.s32.totalorder %v294_v57, 0  ;;  %vm299_vm8 = vcmp.eq.s32.totalorder %v294_v57, 2 }
  0xc4   :  { %v279_v51 = vor.u32 4788187, %v278_v10  ;;  %v282_v53 = vcvt.s32.f32 %v275_v9  ;;  %v167_v55 = vsel %vm1731_vm13, 0, %v1730_v11  ;;  %vm295_vm9 = vcmp.lt.s32.totalorder %v294_v57, 2 }
  0xc5   :  { %v168_v14 = vsub.s32 32, %v167_v55  ;;  %v172_v15 = vsub.s32 4294967266, %v167_v55  ;;  %v169_v52 = vshll.u32 %v160_v50, %v167_v55  ;;  %vm195_vm10 = vcmp.eq.s32.totalorder %v190_v2, 2 }
  0xc6   :  { %v280_v12 = vand.u32 2147483647, %v279_v51  ;;  %vm399_vm11 = vcmp.eq.s32.totalorder %v397_v4, 0  ;;  %vm402_vm12 = vcmp.eq.s32.totalorder %v397_v4, 2  ;;  %vm192_vm13 = vcmp.eq.s32.totalorder %v190_v2, 0 }
  0xc7   :  { %v170_v16 = vshrl.u32 %v152_v13, %v168_v14  ;;  %v173_v24 = vadd.s32 127, %v172_v15 }
  0xc8   :  { %v283_v48 = vmul.f32 %v282_v53, %v280_v12 }
  0xc9   :  { %v171_v26 = vor.u32 %v170_v16, %v169_v52  ;;  %v174_v28 = vshll.u32 %v173_v24, 23 }
  0xca   :  { %v284_v25 = vxor.u32 2147483648, %v283_v48 }
  0xcb   :  { %v175_v35 = vor.u32 4788187, %v174_v28  ;;  %v178_v30 = vcvt.s32.f32 %v171_v26 }
  0xcc   :  { %v285_v23 = vsel %vm202_vm14, %v284_v25, %v283_v48  ;;  %vm191_vm14 = vcmp.lt.s32.totalorder %v190_v2, 2 }
  0xcd   :  { %v288_v31 = vsel %vm201_vm15, %v2017_v34, %v285_v23  ;;  %v176_v27 = vand.u32 2147483647, %v175_v35  ;;  %vm398_vm15 = vcmp.lt.s32.totalorder %v397_v4, 2  ;;  %v1851_v34 = vld [vmem:[%s2418_s4 + $0x8] sm:$0xff]   ;;  %v691_v4 = vpop.permute.xlu0 %690 }
  0xce   :  { %1862 = vcosq.f32 %v288_v31  ;;  %v1853_v35 = vld [vmem:[%s2417_s3 + $0x8] sm:$0xff]  }
  0xcf   :  { %1864 = vsinq.f32 %v288_v31  ;;  %v179_v39 = vmul.f32 %v178_v30, %v176_v27  ;;  %v1852_v31 = vld [vmem:[%s2417_s3] sm:$0xff]   ;;  %v723_v30 = vld [vmem:[%s2420_s6 + $0x8] sm:$0xff] }
  0xd0   :  { %v722_v27 = vld [vmem:[%s2420_s6] sm:$0xff]  ;;  %733 = vperm.xlu0 %1849, %v723_v30  }
  0xd1   :  { %v180_v41 = vxor.u32 2147483648, %v179_v39  ;;  %728 = vperm.xlu1 %1848, %v722_v27  }
  0xd3   :  { %v181_v37 = vsel %vm98_vm0, %v180_v41, %v179_v39  ;;  %vm188_vm0 = vweird.f32 %v2015_v33  ;;  %v1787_v39 = vld [vmem:[%s2416_s2 + $0x20] sm:$0xff]  ;;  %v1788_v41 = vld [vmem:[%s2416_s2 + $0x28] sm:$0xff] }
  0xd4   :  { %v184_v44 = vsel %vm97_vm1, %v2015_v33, %v181_v37  ;;  %vm532_vm1 = vcmask 64512   ;;  %1499 = vperm.xlu0 %1849, %v1787_v39   ;;  %v1790_v37 = vld [vmem:[%s2416_s2 + $0x38] sm:$0xff] }
  0xd5   :  { %1866 = vcosq.f32 %v184_v44  ;;  %738 = vperm.xlu1 %1848, %v724_v36  }
  0xd6   :  { %1868 = vsinq.f32 %v184_v44  ;;  %v681_v44 = vpop.permute.xlu1 %680 }
  0xd8   :  { %v1863_v46 = vpop.eup %1862  ;;  %1509 = vperm.xlu0 %1849, %v1789_v40  }
  0xd9   :  { %v1865_v32 = vpop.eup %1864  ;;  %v300_v50 = vxor.u32 2147483648, %v1863_v46  ;;  %743 = vperm.xlu1 %1848, %v725_v54  }
  0xda   :  { %v297_v56 = vxor.u32 2147483648, %v1865_v32 }
  0xdb   :  { %v507_v59 = vsel %vm505_vm2, %v300_v50, %v1865_v32  ;;  %v301_v9 = vsel %vm299_vm8, %v300_v50, %v1865_v32  ;;  %v686_v32 = vpop.permute.xlu1 %685  ;;  %vm756_vm2 = vcmask 261120  }
  0xdc   :  { %v504_v38 = vsel %vm502_vm3, %v1863_v46, %v297_v56  ;;  %v298_v8 = vsel %vm296_vm7, %v1863_v46, %v297_v56  ;;  %1547 = vperm.xlu0 %1849, %v722_v27  }
  0xdd   :  { %v508_v45 = vsel %vm501_vm4, %v504_v38, %v507_v59  ;;  %v302_v12 = vsel %vm295_vm9, %v298_v8, %v301_v9  ;;  %1504 = vperm.xlu1 %1848, %v1788_v41  }
  0xde   :  { %v509_v62 = vsel %vm292_vm5, nan, %v508_v45  ;;  %v303_v52 = vsel %vm292_vm5, nan, %v302_v12 }
  0xdf   :  { %v521_v0 = vpack.c.bf16 %v509_v62, %v509_v62  ;;  %v1867_v6 = vpop.eup %1866  ;;  %v515_v26 = vpack.c.bf16 %v303_v52, %v303_v52 }
  0xe0   :  { %v1869_v10 = vpop.eup %1868  ;;  %v196_v11 = vxor.u32 2147483648, %v1867_v6  ;;  %1557 = vperm.xlu0 %1849, %v724_v36  }
  0xe1   :  { %1746 = vmatprep.subr.msk.bf16.mxu0 %vm539_vm6, %v521_v0  ;;  %v193_v51 = vxor.u32 2147483648, %v1869_v10  ;;  %1514 = vperm.xlu1 %1848, %v1790_v37  }
  0xe2   :  { %v197_v53 = vsel %vm195_vm10, %v196_v11, %v1869_v10  ;;  %v404_v55 = vsel %vm402_vm12, %v196_v11, %v1869_v10  ;;  %v696_v11 = vpop.permute.xlu1 %695 }
  0xe3   :  { %v194_v13 = vsel %vm192_vm13, %v1867_v6, %v193_v51  ;;  %v401_v14 = vsel %vm399_vm11, %v1867_v6, %v193_v51 }
  0xe4   :  { %v198_v15 = vsel %vm191_vm14, %v194_v13, %v197_v53  ;;  %v405_v48 = vsel %vm398_vm15, %v401_v14, %v404_v55  ;;  %832 = vperm.xlu0 %1849, %v829_v42  }
  0xe5   :  { %v199_v16 = vsel %vm188_vm0, nan, %v198_v15  ;;  %v406_v24 = vsel %vm188_vm0, nan, %v405_v48  ;;  %1552 = vperm.xlu1 %1848, %v723_v30  }
  0xe6   :  { %v520_v25 = vpack.c.bf16 %v406_v24, %v406_v24  ;;  %v514_v28 = vpack.c.bf16 %v199_v16, %v199_v16 }
  0xe8   :  { %v541_v23 = vsel %vm539_vm6, %v520_v25, 0  ;;  %v616_v33 = vsel %vm539_vm6, %v514_v28, 0  ;;  %v1854_v25 = vld [vmem:[%s2419_s5] sm:$0xff]   ;;  %v896_v28 = vpop.permute.xlu1 %895 }
  0xe9   :  { %547 = vmatpush1.bf16.msra.mxu0 %v541_v23  ;;  %1562 = vperm.xlu1 %1848, %v725_v54   ;;  %v902_v23 = vpop.permute.xlu0 %901 }
  0xea   :  { %1751 = vmatprep.subr.msk.bf16.mxu0 %vm539_vm6, %v515_v26  ;;  %v1855_v26 = vld [vmem:[%s2419_s5 + $0x8] sm:$0xff]  }
  0xec   :  { %1747 = vmatmul.mubr.msk.bf16.vlgmr.msra.gmra.mrb[0].mxu0 %vm532_vm1, %v1850_v29  ;;  %v898_v29 = vmul.f32 %v896_v28, %v1996_v17 }
  0xed   :  { %622 = vmatpush1.bf16.msra.mxu0 %v616_v33  ;;  %588 = vmatprep.mubr.bf16.mxu0 %v1902_v1  ;;  %v904_v33 = vmul.f32 %v902_v23, %v2000_v19 }
  0xee   :  { %1650 = vperm.xlu1 %1848, %v1647_v43  }
  0xef   :  { %v906_v27 = vadd.f32 %v904_v33, %v898_v29 }
  0xf4   :  { %1748 = vmatmul.mubr.msk.bf16.gmra.mrb[4].mxu0 %vm532_vm1, %v1851_v34  ;;  %v910_v34 = vpop.permute.xlu1 %909 }
  0xf5   :  { %653 = vmatprep.mubr.bf16.mxu0 %v1902_v1  ;;  %v912_v30 = vmul.f32 %v910_v34, %v2004_v21  ;;  %v913_v39 = vmul.f32 %v910_v34, %v2006_v22 }
  0xf7   :  { %v2182_v54 = vadd.f32 %v912_v30, %v906_v27 }
  0xf9   :  { %v919_v41 = vand.u32 2139095040, %v2182_v54 }
  0xfb   :  { %v920_v19 = vshrl.u32 %v919_v41, 23 }
  0xfc   :  { %1752 = vmatmul.mubr.msk.bf16.vlgmr.msra.gmra.mrb[0].mxu0 %vm532_vm1, %v1852_v31  ;;  %v899_v31 = vmul.f32 %v896_v28, %v1998_v18 }
  0xfd   :  { %663 = vmatprep.mubr.bf16.mxu0 %v1902_v1  ;;  %v1761_v42 = vadd.s32 4294967169, %v920_v19 }
  0xff   :  { %v926_v43 = vadd.s32 1, %v1761_v42 }
 0x101   :  { %vm927_vm3 = vcmp.gt.s32.totalorder %v926_v43, 0 }
 0x102   :  { %v928_v21 = vsel %vm927_vm3, %v926_v43, 0 }
 0x104   :  { %1753 = vmatmul.mubr.msk.bf16.gmra.mrb[4].mxu0 %vm532_vm1, %v1853_v35  ;;  %v905_v35 = vmul.f32 %v902_v23, %v2002_v20 }
 0x105   :  { %1613 = vmatprep.mubr.bf16.mxu0 %v1902_v1 }
 0x106   :  { %v907_v36 = vadd.f32 %v905_v35, %v899_v31 }
 0x108   :  { %v2184_v40 = vadd.f32 %v913_v39, %v907_v36 }
 0x10a   :  { %v1023_v17 = vand.u32 2139095040, %v2184_v40 }
 0x10c   :  { %v1024_v37 = vshrl.u32 %v1023_v17, 23 }
 0x10e   :  { %v1765_v18 = vadd.s32 4294967169, %v1024_v37 }
 0x110   :  { %v1030_v20 = vadd.s32 1, %v1765_v18 }
 0x112   :  { %vm1031_vm4 = vcmp.gt.s32.totalorder %v1030_v20, 0 }
 0x1cf   :  { %v655_v46 = vpop.f32.mrb[0].mxu0 }
 0x1d0   :  { %v698_v47 = vadd.f32 %v681_v44, %v655_v46  ;;  %v657_v49 = vpop.f32.mrb[1].mxu0  ;;  %v930_v46 = vand.u32 31, %v928_v21 }
 0x1d1   :  { %v699_v50 = vadd.f32 %v681_v44, %v657_v49  ;;  %v659_v56 = vpop.f32.mrb[2].mxu0  ;;  %v1032_v44 = vsel %vm1031_vm4, %v1030_v20, 0  ;;  %vm918_vm4 = vcmp.lt.s32.totalorder %v2182_v54, 0 }
 0x1d2   :  { %v700_v59 = vadd.f32 %v686_v32, %v659_v56  ;;  %v661_v61 = vpop.f32.mrb[3].mxu0  ;;  %v706_v38 = vmax.f32 %v698_v47, 0.0  ;;  %v1034_v22 = vand.u32 31, %v1032_v44  ;;  %v916_v47 = vand.u32 2147483647, %v2182_v54 }
 0x1d3   :  { %v701_v57 = vadd.f32 %v686_v32, %v661_v61  ;;  %v707_v62 = vmax.f32 %v699_v50, 0.0  ;;  %v2189_v49 = vsub.s32 32, %v930_v46  ;;  %v2195_v56 = vshrl.u32 %v928_v21, 5 }
 0x1d4   :  { %v708_v45 = vmax.f32 %v700_v59, 0.0  ;;  %v2191_v32 = vsub.s32 32, %v1034_v22  ;;  %v923_v50 = vand.u32 8388607, %v916_v47  ;;  %v1020_v59 = vand.u32 2147483647, %v2184_v40 }
 0x1d5   :  { %v709_v0 = vmax.f32 %v701_v57, 0.0  ;;  %v942_v61 = vshll.u32 %v1905_v58, %v930_v46  ;;  %v943_v57 = vshrl.u32 %v1906_v60, %v2189_v49  ;;  %vm951_vm5 = vcmp.lt.s32.totalorder %v2195_v56, 4 }
 0x1d6   :  { %v718_v2 = vpack.c.bf16 %v708_v45, %v706_v38  ;;  %v945_v38 = vshll.u32 %v1906_v60, %v930_v46  ;;  %v946_v45 = vshrl.u32 %v1908_v3, %v2189_v49  ;;  %v924_v23 = vor.u32 8388608, %v923_v50 }
 0x1d7   :  { %v665_v6 = vpop.f32.mrb[4].mxu0  ;;  %v719_v8 = vpack.c.bf16 %v709_v0, %v707_v62  ;;  %v933_v62 = vshll.u32 %v1907_v63, %v930_v46  ;;  %v936_v0 = vshll.u32 %v1909_v5, %v930_v46  ;;  %vm948_vm8 = vcmp.lt.s32.totalorder %v2195_v56, 1 }
 0x1d8   :  { %v702_v9 = vadd.f32 %v691_v4, %v665_v6  ;;  %v667_v10 = vpop.f32.mrb[5].mxu0  ;;  %v934_v6 = vshrl.u32 %v1909_v5, %v2189_v49  ;;  %vm950_vm9 = vcmp.lt.s32.totalorder %v2195_v56, 3  ;;  %vm949_vm12 = vcmp.lt.s32.totalorder %v2195_v56, 2 }
 0x1d9   :  { %v703_v51 = vadd.f32 %v691_v4, %v667_v10  ;;  %v669_v12 = vpop.f32.mrb[6].mxu0  ;;  %763 = vmatprep.subr.bf16.mxu1 %v719_v8  ;;  %v2207_v4 = vshrl.u32 %v1032_v44, 5  ;;  %v937_v8 = vshrl.u32 %v1910_v7, %v2189_v49  ;;  %v1047_v10 = vshrl.u32 %v1906_v60, %v2191_v32 }
 0x1da   :  { %v704_v53 = vadd.f32 %v696_v11, %v669_v12  ;;  %v671_v55 = vpop.f32.mrb[7].mxu0  ;;  %764 = vmatpush1.bf16.msra.mxu1 %v718_v2  ;;  %v710_v14 = vmax.f32 %v702_v9, 0.0  ;;  %v939_v2 = vshll.u32 %v1910_v7, %v930_v46  ;;  %v1046_v9 = vshll.u32 %v1905_v58, %v1034_v22 }
 0x1db   :  { %v705_v13 = vadd.f32 %v696_v11, %v671_v55  ;;  %v711_v48 = vmax.f32 %v703_v51, 0.0  ;;  %v940_v11 = vshrl.u32 %v1905_v58, %v2189_v49  ;;  %v1049_v51 = vshll.u32 %v1906_v60, %v1034_v22 }
 0x1dc   :  { %v712_v15 = vmax.f32 %v704_v53, 0.0  ;;  %v1050_v12 = vshrl.u32 %v1908_v3, %v2191_v32  ;;  %v944_v53 = vor.u32 %v943_v57, %v942_v61  ;;  %v947_v55 = vor.u32 %v946_v45, %v945_v38 }
 0x1dd   :  { %v713_v52 = vmax.f32 %v705_v13, 0.0  ;;  %v1037_v13 = vshll.u32 %v1907_v63, %v1034_v22  ;;  %v1044_v60 = vshrl.u32 %v1905_v58, %v2191_v32  ;;  %v1027_v3 = vand.u32 8388607, %v1020_v59 }
 0x1de   :  { %v720_v16 = vpack.c.bf16 %v712_v15, %v710_v14  ;;  %v1040_v14 = vshll.u32 %v1909_v5, %v1034_v22  ;;  %v1038_v15 = vshrl.u32 %v1909_v5, %v2191_v32  ;;  %v1051_v28 = vor.u32 %v1050_v12, %v1049_v51 }
 0x1df   :  { %v721_v24 = vpack.c.bf16 %v713_v52, %v711_v48  ;;  %v1041_v48 = vshrl.u32 %v1910_v7, %v2191_v32  ;;  %v1043_v52 = vshll.u32 %v1910_v7, %v1034_v22  ;;  %vm1055_vm7 = vcmp.lt.s32.totalorder %v2207_v4, 4 }
 0x1e0   :  { %v957_v5 = vsel %vm951_vm5, %v944_v53, 920167782  ;;  %v961_v58 = vsel %vm951_vm5, %v947_v55, 1326507024  ;;  %v1039_v7 = vor.u32 %v1038_v15, %v1037_v13  ;;  %v1028_v34 = vor.u32 8388608, %v1027_v3 }
 0x1e1   :  { %765 = vmatprep.subr.bf16.mxu1 %v721_v24  ;;  %v1048_v24 = vor.u32 %v1047_v10, %v1046_v9  ;;  %v1042_v29 = vor.u32 %v1041_v48, %v1040_v14  ;;  %v1045_v33 = vor.u32 %v1044_v60, %v1043_v52  ;;  %vm1052_vm10 = vcmp.lt.s32.totalorder %v2207_v4, 1 }
 0x1e2   :  { %766 = vmatpush1.bf16.msra.mxu1 %v720_v16  ;;  %v935_v16 = vor.u32 %v934_v6, %v933_v62  ;;  %vm1054_vm11 = vcmp.lt.s32.totalorder %v2207_v4, 3  ;;  %v1065_v30 = vsel %vm1055_vm7, %v1051_v28, 1326507024  ;;  %v962_v39 = vsel %vm950_vm9, %v944_v53, %v961_v58 }
 0x1e3   :  { %v1061_v31 = vsel %vm1055_vm7, %v1048_v24, 920167782  ;;  %v964_v41 = vshll.u32 %v924_v23, 8  ;;  %vm1053_vm13 = vcmp.lt.s32.totalorder %v2207_v4, 2  ;;  %v1060_v17 = vsel %vm1052_vm10, %v1039_v7, %v1042_v29 }
 0x1e4   :  { %v1062_v19 = vsel %vm1054_vm11, %v1045_v33, %v1061_v31  ;;  %v1064_v42 = vsel %vm1052_vm10, %v1042_v29, %v1045_v33  ;;  %v1066_v18 = vsel %vm1054_vm11, %v1048_v24, %v1065_v30  ;;  %v1068_v20 = vshll.u32 %v1028_v34, 8 }
 0x1e5   :  { %1756 = vmatmul.mubr.msk.bf16.vlgmr.msra.gmra.mrb[0].mxu1 %vm756_vm2, %v1854_v25  ;;  %v938_v25 = vor.u32 %v937_v8, %v936_v0  ;;  %v1063_v21 = vsel %vm1053_vm13, %v1060_v17, %v1062_v19  ;;  %v1067_v22 = vsel %vm1053_vm13, %v1064_v42, %v1066_v18  ;;  %v932_v50 = vshrl.u32 %v1907_v63, %v2189_v49 }
 0x1e6   :  { %805 = vmatprep.mubr.bf16.mxu1 %v1902_v1  ;;  %v2282_v45 = vmul.u32.u64.low %v1068_v20, %v1063_v21  ;;  %v2283_v62 = vmul.u32.u64.high %v1068_v20, %v1063_v21, %v2282_v45  ;;  %v1036_v0 = vshrl.u32 %v1907_v63, %v2191_v32  ;;  %v1057_v8 = vsel %vm1055_vm7, %v1045_v33, 2102212464 }
 0x1e7   :  { %v956_v35 = vsel %vm948_vm8, %v935_v16, %v938_v25  ;;  %v952_v49 = vsel %vm948_vm8, %v932_v50, %v935_v16  ;;  %vm2318_vm7 = vcmp.le.f32.partialorder %v916_v47, 0.7853982 }
 0x1e8   :  { %v1056_v10 = vsel %vm1052_vm10, %v1036_v0, %v1039_v7  ;;  %v1078_v12 = vadd.s32 1, %v2283_v62 }
 0x1ed   :  { %1757 = vmatmul.mubr.msk.bf16.gmra.mrb[4].mxu1 %vm756_vm2, %v1855_v26  ;;  %v941_v26 = vor.u32 %v940_v11, %v939_v2  ;;  %v2287_v2 = vmul.u32.u64.low %v1068_v20, %v1067_v22  ;;  %v2288_v6 = vmul.u32.u64.high %v1068_v20, %v1067_v22, %v2287_v2  ;;  %v1058_v11 = vsel %vm1054_vm11, %v1042_v29, %v1057_v8 }
 0x1ee   :  { %870 = vmatprep.mubr.bf16.mxu1 %v1902_v1  ;;  %v1059_v51 = vsel %vm1053_vm13, %v1056_v10, %v1058_v11 }
 0x1ef   :  { %v958_v27 = vsel %vm950_vm9, %v941_v26, %v957_v5  ;;  %v960_v36 = vsel %vm948_vm8, %v938_v25, %v941_v26  ;;  %v953_v38 = vsel %vm951_vm5, %v941_v26, 2102212464  ;;  %vm1077_vm15 = vc.u32 %v2288_v6, %v2282_v45 }
 0x1f0   :  { %v959_v37 = vsel %vm949_vm12, %v956_v35, %v958_v27  ;;  %v963_v43 = vsel %vm949_vm12, %v960_v36, %v962_v39  ;;  %v954_v9 = vsel %vm950_vm9, %v938_v25, %v953_v38  ;;  %v1075_v13 = vmul.u32 %v1068_v20, %v1059_v51 }
 0x1f1   :  { %v2270_v44 = vmul.u32.u64.low %v964_v41, %v959_v37  ;;  %v2271_v46 = vmul.u32.u64.high %v964_v41, %v959_v37, %v2270_v44  ;;  %v2277_v61 = vmul.u32.u64.low %v964_v41, %v963_v43  ;;  %v2278_v57 = vmul.u32.u64.high %v964_v41, %v963_v43, %v2277_v61 }
 0x1f2   :  { %v955_v63 = vsel %vm949_vm12, %v952_v49, %v954_v9  ;;  %v1079_v14 = vsel %vm1077_vm15, %v1078_v12, %v2283_v62  ;;  %vm1022_vm5 = vcmp.lt.s32.totalorder %v2184_v40, 0  ;;  %vm1021_vm8 = vcmp.le.f32.partialorder %v1020_v59, 0.7853982 }
 0x1f3   :  { %v974_v32 = vadd.s32 1, %v2271_v46  ;;  %vm973_vm14 = vc.u32 %v2278_v57, %v2270_v44  ;;  %v971_v53 = vmul.u32 %v964_v41, %v955_v63  ;;  %v1080_v56 = vadd.s32 %v1079_v14, %v1075_v13 }
 0x1f4   :  { %v972_v30 = vadd.s32 %v2270_v44, %v2278_v57  ;;  %v1076_v41 = vadd.s32 %v2282_v45, %v2288_v6 }
 0x1f5   :  { %v975_v55 = vsel %vm973_vm14, %v974_v32, %v2271_v46  ;;  %v1081_v52 = vadd.s32 536870912, %v1080_v56 }
 0x1f6   :  { %v976_v15 = vadd.s32 %v975_v55, %v971_v53  ;;  %v729_v53 = vpop.permute.xlu1 %728 }
 0x1f7   :  { %v1082_v16 = vshrl.u32 %v1081_v52, 30 }
 0x1f8   :  { %v977_v48 = vadd.s32 536870912, %v976_v15 }
 0x1f9   :  { %v1083_v24 = vshll.u32 %v1082_v16, 30  ;;  %v1106_v63 = vsub.s32 4, %v1082_v16 }
 0x1fa   :  { %v978_v60 = vshrl.u32 %v977_v48, 30 }
 0x1fb   :  { %v1084_v25 = vsub.s32 %v1080_v56, %v1083_v24  ;;  %v1107_v47 = vsel %vm1022_vm5, %v1106_v63, %v1082_v16 }
 0x1fc   :  { %v979_v3 = vshll.u32 %v978_v60, 30  ;;  %v1002_v32 = vsub.s32 4, %v978_v60  ;;  %v1109_v51 = vsel %vm1021_vm8, 0, %v1107_v47 }
 0x1fd   :  { %v1086_v28 = vsub.s32 0, %v1084_v25  ;;  %v1113_v13 = vadd.s32 3, %v1109_v51  ;;  %v1320_v56 = vand.u32 3, %v1109_v51 }
 0x1fe   :  { %v980_v4 = vsub.s32 %v976_v15, %v979_v3  ;;  %v1003_v12 = vsel %vm918_vm4, %v1002_v32, %v978_v60 }
 0x1ff   :  { %v1766_v5 = vmin.u32 %v1086_v28, %v1084_v25  ;;  %v1005_v55 = vsel %vm2318_vm7, 0, %v1003_v12  ;;  %vm1322_vm9 = vcmp.eq.s32.totalorder %v1320_v56, 0  ;;  %vm1325_vm11 = vcmp.eq.s32.totalorder %v1320_v56, 2 }
 0x200   :  { %v982_v26 = vsub.s32 0, %v980_v4  ;;  %v1217_v48 = vand.u32 3, %v1005_v55  ;;  %vm1321_vm13 = vcmp.lt.s32.totalorder %v1320_v56, 2 }
 0x201   :  { %v1088_v7 = vclz %v1766_v5  ;;  %v1114_v5 = vand.u32 3, %v1113_v13 }
 0x202   :  { %v1762_v23 = vmin.u32 %v982_v26, %v980_v4  ;;  %vm1219_vm10 = vcmp.eq.s32.totalorder %v1217_v48, 0  ;;  %vm1222_vm12 = vcmp.eq.s32.totalorder %v1217_v48, 2  ;;  %vm1218_vm14 = vcmp.lt.s32.totalorder %v1217_v48, 2 }
 0x203   :  { %v1767_v33 = vadd.s32 4294967294, %v1088_v7  ;;  %v739_v7 = vpop.permute.xlu1 %738  ;;  %vm1116_vm15 = vcmp.eq.s32.totalorder %v1114_v5, 0 }
 0x204   :  { %v984_v58 = vclz %v1762_v23 }
 0x205   :  { %vm1768_vm3 = vcmp.lt.s32.totalorder %v1767_v33, 0 }
 0x206   :  { %v1763_v29 = vadd.s32 4294967294, %v984_v58  ;;  %v1091_v31 = vsel %vm1768_vm3, 0, %v1767_v33  ;;  %v1009_v58 = vadd.s32 3, %v1005_v55  ;;  %vm1112_vm3 = vweird.f32 %v2184_v40  ;;  %v824_v55 = vld [vmem:[%s2421_s7] sm:$0x1] }
 0x207   :  { %v1096_v27 = vsub.s32 4294967266, %v1091_v31  ;;  %v1092_v17 = vsub.s32 32, %v1091_v31  ;;  %v1093_v43 = vshll.u32 %v1084_v25, %v1091_v31 }
 0x208   :  { %vm1764_vm0 = vcmp.lt.s32.totalorder %v1763_v29, 0 }
 0x209   :  { %v987_v34 = vsel %vm1764_vm0, 0, %v1763_v29  ;;  %v1097_v19 = vadd.s32 127, %v1096_v27  ;;  %v1094_v20 = vshrl.u32 %v1076_v41, %v1092_v17  ;;  %vm1119_vm0 = vcmp.eq.s32.totalorder %v1114_v5, 2 }
 0x20a   :  { %v992_v35 = vsub.s32 4294967266, %v987_v34  ;;  %v988_v36 = vsub.s32 32, %v987_v34  ;;  %v989_v37 = vshll.u32 %v980_v4, %v987_v34  ;;  %v734_v4 = vpop.permute.xlu0 %733 }
 0x20b   :  { %v1098_v21 = vshll.u32 %v1097_v19, 23  ;;  %v1095_v50 = vor.u32 %v1094_v20, %v1093_v43 }
 0x20c   :  { %v993_v39 = vadd.s32 127, %v992_v35  ;;  %v990_v42 = vshrl.u32 %v972_v30, %v988_v36 }
 0x20d   :  { %v1099_v61 = vor.u32 4788187, %v1098_v21  ;;  %v1102_v44 = vcvt.s32.f32 %v1095_v50  ;;  %v744_v21 = vpop.permute.xlu1 %743  ;;  %v1010_v50 = vand.u32 3, %v1009_v58 }
 0x20e   :  { %v994_v18 = vshll.u32 %v993_v39, 23  ;;  %v991_v46 = vor.u32 %v990_v42, %v989_v37 }
 0x20f   :  { %v1100_v0 = vand.u32 2147483647, %v1099_v61 }
 0x210   :  { %v995_v22 = vor.u32 4788187, %v994_v18  ;;  %v998_v62 = vcvt.s32.f32 %v991_v46 }
 0x211   :  { %v1103_v2 = vmul.f32 %v1102_v44, %v1100_v0 }
 0x212   :  { %v996_v38 = vand.u32 2147483647, %v995_v22 }
 0x213   :  { %v1104_v45 = vxor.u32 2147483648, %v1103_v2 }
 0x214   :  { %v999_v57 = vmul.f32 %v998_v62, %v996_v38 }
 0x215   :  { %v1105_v9 = vsel %vm1022_vm5, %v1104_v45, %v1103_v2  ;;  %vm1008_vm5 = vweird.f32 %v2182_v54 }
 0x216   :  { %v1000_v8 = vxor.u32 2147483648, %v999_v57  ;;  %v1108_v11 = vsel %vm1021_vm8, %v2184_v40, %v1105_v9  ;;  %vm1015_vm8 = vcmp.eq.s32.totalorder %v1010_v50, 2  ;;  %v1856_v40 = vld [vmem:[%s2418_s4] sm:$0xff]  }
 0x218   :  { %v1001_v6 = vsel %vm918_vm4, %v1000_v8, %v999_v57  ;;  %vm1115_vm4 = vcmp.lt.s32.totalorder %v1114_v5, 2 }
 0x219   :  { %v1004_v10 = vsel %vm2318_vm7, %v2182_v54, %v1001_v6  ;;  %vm1012_vm7 = vcmp.eq.s32.totalorder %v1010_v50, 0  ;;  %v1858_v54 = vld [vmem:[%s2417_s3] sm:$0xff]  }
 0x21a   :  { %1870 = vcosq.f32 %v1004_v10 }
 0x21b   :  { %1872 = vsinq.f32 %v1004_v10 }
 0x21c   :  { %1874 = vcosq.f32 %v1108_v11 }
 0x21d   :  { %1876 = vsinq.f32 %v1108_v11 }
 0x224   :  { %v2330_v59 = vpop.eup %1870 }
 0x225   :  { %v2334_v14 = vpop.eup %1872  ;;  %v1016_v23 = vxor.u32 2147483648, %v2330_v59 }
 0x226   :  { %v1875_v52 = vpop.eup %1874  ;;  %v1013_v33 = vxor.u32 2147483648, %v2334_v14 }
 0x227   :  { %v1877_v16 = vpop.eup %1876  ;;  %v1120_v27 = vxor.u32 2147483648, %v1875_v52  ;;  %v1224_v20 = vsel %vm1222_vm12, %v1016_v23, %v2334_v14  ;;  %v1017_v51 = vsel %vm1015_vm8, %v1016_v23, %v2334_v14 }
 0x228   :  { %v1117_v35 = vxor.u32 2147483648, %v1877_v16  ;;  %v1221_v19 = vsel %vm1219_vm10, %v2330_v59, %v1013_v33  ;;  %v1014_v47 = vsel %vm1012_vm7, %v2330_v59, %v1013_v33 }
 0x229   :  { %v1327_v43 = vsel %vm1325_vm11, %v1120_v27, %v1877_v16  ;;  %v1225_v44 = vsel %vm1218_vm14, %v1221_v19, %v1224_v20  ;;  %v1121_v45 = vsel %vm1119_vm0, %v1120_v27, %v1877_v16  ;;  %v1500_v16 = vpop.permute.xlu0 %1499  ;;  %v1505_v27 = vpop.permute.xlu1 %1504 }
 0x22a   :  { %v1324_v18 = vsel %vm1322_vm9, %v1875_v52, %v1117_v35  ;;  %v1118_v8 = vsel %vm1116_vm15, %v1875_v52, %v1117_v35  ;;  %v1226_v11 = vsel %vm1008_vm5, nan, %v1225_v44  ;;  %vm1011_vm9 = vcmp.lt.s32.totalorder %v1010_v50, 2 }
 0x22b   :  { %v1328_v0 = vsel %vm1321_vm13, %v1324_v18, %v1327_v43  ;;  %v1122_v32 = vsel %vm1115_vm4, %v1118_v8, %v1121_v45 }
 0x22c   :  { %v1329_v10 = vsel %vm1112_vm3, nan, %v1328_v0  ;;  %v1123_v13 = vsel %vm1112_vm3, nan, %v1122_v32 }
 0x22d   :  { %v1341_v12 = vpack.c.bf16 %v1329_v10, %v1329_v10  ;;  %v1335_v56 = vpack.c.bf16 %v1123_v13, %v1123_v13  ;;  %v1515_v50 = vpop.permute.xlu1 %1514  ;;  %v1861_v10 = vld [vmem:[%s2419_s5 + $0x8] sm:$0xff]  }
 0x2b8   :  { %v797_v15 = vpop.f32.mrb[0].mxu1 }
 0x2b9   :  { %v798_v3 = vadd.f32 %v797_v15, %v729_v53  ;;  %v799_v24 = vpop.f32.mrb[1].mxu1  ;;  %v1018_v15 = vsel %vm1011_vm9, %v1014_v47, %v1017_v51  ;;  %v1553_v47 = vpop.permute.xlu1 %1552 }
 0x2ba   :  { %v800_v25 = vadd.f32 %v799_v24, %v729_v53  ;;  %v801_v26 = vpop.f32.mrb[2].mxu1  ;;  %v1340_v53 = vpack.c.bf16 %v1226_v11, %v1226_v11  ;;  %v1019_v14 = vsel %vm1008_vm5, nan, %v1018_v15  ;;  %v1859_v24 = vld [vmem:[%s2417_s3 + $0x8] sm:$0xff]  }
 0x2bb   :  { %v802_v60 = vadd.f32 %v801_v26, %v734_v4  ;;  %v803_v28 = vpop.f32.mrb[3].mxu1  ;;  %v816_v34 = vmax.f32 %v798_v3, 0.0  ;;  %v1334_v48 = vpack.c.bf16 %v1019_v14, %v1019_v14  ;;  %v1857_v3 = vld [vmem:[%s2418_s4 + $0x8] sm:$0xff]  }
 0x2bc   :  { %v804_v29 = vadd.f32 %v803_v28, %v734_v4  ;;  %v817_v30 = vmax.f32 %v800_v25, 0.0  ;;  %v1359_v59 = vsel %vm539_vm6, %v1340_v53, 0  ;;  %v1510_v4 = vpop.permute.xlu0 %1509 }
 0x2bd   :  { %v818_v31 = vmax.f32 %v802_v60, 0.0  ;;  %v1434_v52 = vsel %vm539_vm6, %v1334_v48, 0 }
 0x2be   :  { %v819_v36 = vmax.f32 %v804_v29, 0.0 }
 0x2bf   :  { %v825_v39 = vpack.c.bf16 %v818_v31, %v816_v34 }
 0x2c0   :  { %v826_v41 = vpack.c.bf16 %v819_v36, %v817_v30  ;;  %v807_v17 = vpop.f32.mrb[4].mxu1  ;;  %v1548_v25 = vpop.permute.xlu0 %1547 }
 0x2c1   :  { %v808_v37 = vadd.f32 %v807_v17, %v739_v7  ;;  %v809_v42 = vpop.f32.mrb[5].mxu1 }
 0x2c2   :  { %v810_v46 = vadd.f32 %v809_v42, %v739_v7  ;;  %v811_v22 = vpop.f32.mrb[6].mxu1  ;;  %838 = vmatprep.subr.bf16.mxu1 %v826_v41 }
 0x2c3   :  { %v812_v61 = vadd.f32 %v811_v22, %v744_v21  ;;  %v813_v38 = vpop.f32.mrb[7].mxu1  ;;  %839 = vmatpush1.bf16.msra.mxu1 %v825_v39  ;;  %v820_v57 = vmax.f32 %v808_v37, 0.0 }
 0x2c4   :  { %v814_v62 = vadd.f32 %v813_v38, %v744_v21  ;;  %v821_v6 = vmax.f32 %v810_v46, 0.0  ;;  %v2384_v26 = vpop.permute.xlu0 %1557 }
 0x2c5   :  { %v822_v2 = vmax.f32 %v812_v61, 0.0 }
 0x2c6   :  { %v823_v49 = vmax.f32 %v814_v62, 0.0 }
 0x2c7   :  { %v827_v9 = vpack.c.bf16 %v822_v2, %v820_v57 }
 0x2c8   :  { %v828_v63 = vpack.c.bf16 %v823_v49, %v821_v6  ;;  %v833_v60 = vpop.permute.xlu0 %832 }
 0x2ca   :  { %840 = vmatprep.subr.bf16.mxu1 %v828_v63 }
 0x2cb   :  { %841 = vmatpush1.bf16.msra.mxu1 %v827_v9  ;;  %v1860_v9 = vld [vmem:[%s2419_s5] sm:$0xff]  }
 0x2cc   :  { %1779 = vmatprep.subr.msk.bf16.mxu1 %vm539_vm6, %v1341_v12 }
 0x2ce   :  { %1758 = vmatmul.mubr.msk.bf16.vlgmr.msra.gmra.mrb[8].mxu1 %vm756_vm2, %v824_v55 }
 0x2cf   :  { %1365 = vmatpush1.bf16.msra.mxu1 %v1359_v59  ;;  %1396 = vmatprep.mubr.bf16.mxu1 %v1902_v1 }
 0x2d0   :  { %1784 = vmatprep.subr.msk.bf16.mxu1 %vm539_vm6, %v1335_v56 }
 0x2d6   :  { %1780 = vmatmul.mubr.msk.bf16.vlgmr.msra.gmra.mrb[12].mxu1 %vm532_vm1, %v1856_v40 }
 0x2d7   :  { %1440 = vmatpush1.bf16.msra.mxu1 %v1434_v52  ;;  %1406 = vmatprep.mubr.bf16.mxu1 %v1902_v1 }
 0x2de   :  { %1781 = vmatmul.mubr.msk.bf16.gmra.mrb[16].mxu1 %vm532_vm1, %v1857_v3 }
 0x2df   :  { %1471 = vmatprep.mubr.bf16.mxu1 %v1902_v1 }
 0x2e6   :  { %1785 = vmatmul.mubr.msk.bf16.vlgmr.msra.gmra.mrb[12].mxu1 %vm532_vm1, %v1858_v54 }
 0x2e7   :  { %1481 = vmatprep.mubr.bf16.mxu1 %v1902_v1 }
 0x2ee   :  { %1786 = vmatmul.mubr.msk.bf16.gmra.mrb[16].mxu1 %vm532_vm1, %v1859_v24 }
 0x3a1   :  { %v872_v28 = vpop.f32.mrb[8].mxu1 }
 0x3a2   :  { %v873_v23 = vadd.f32 %v872_v28, %v833_v60  ;;  %v874_v5 = vpop.f32.mrb[9].mxu1 }
 0x3a3   :  { %v875_v58 = vadd.f32 %v874_v5, %v833_v60  ;;  %v876_v7 = vpop.f32.mrb[10].mxu1 }
 0x3a4   :  { %v877_v29 = vpop.f32.mrb[11].mxu1 }
 0x3a5   :  { %v881_v33 = vcombine.low %v873_v23, %v875_v58 }
 0x3a7   :  { %1759 = vst.sshfl [vmem:[#allocation2] sm:$0x33 pattern:$0x76325410] %v881_v33  ;;  %v1642_v33 = vld [vmem:[%s2421_s7] sm:$0x1] }
 0x3b9   :  { %v1473_v34 = vpop.f32.mrb[12].mxu1 }
 0x3ba   :  { %v1517_v31 = vadd.f32 %v1500_v16, %v1473_v34  ;;  %v1475_v35 = vpop.f32.mrb[13].mxu1 }
 0x3bb   :  { %v1518_v30 = vadd.f32 %v1500_v16, %v1475_v35  ;;  %v1477_v36 = vpop.f32.mrb[14].mxu1 }
 0x3bc   :  { %v1519_v39 = vadd.f32 %v1505_v27, %v1477_v36  ;;  %v1479_v41 = vpop.f32.mrb[15].mxu1  ;;  %v1525_v19 = vmax.f32 %v1517_v31, 0.0 }
 0x3bd   :  { %v1520_v17 = vadd.f32 %v1505_v27, %v1479_v41  ;;  %v1526_v42 = vmax.f32 %v1518_v30, 0.0 }
 0x3be   :  { %v1527_v37 = vmax.f32 %v1519_v39, 0.0 }
 0x3bf   :  { %v1528_v18 = vmax.f32 %v1520_v17, 0.0 }
 0x3c0   :  { %v1537_v43 = vpack.c.bf16 %v1527_v37, %v1525_v19 }
 0x3c1   :  { %v1538_v20 = vpack.c.bf16 %v1528_v18, %v1526_v42  ;;  %v1483_v21 = vpop.f32.mrb[16].mxu1 }
 0x3c2   :  { %v1521_v46 = vadd.f32 %v1510_v4, %v1483_v21  ;;  %v1485_v22 = vpop.f32.mrb[17].mxu1 }
 0x3c3   :  { %v1522_v61 = vadd.f32 %v1510_v4, %v1485_v22  ;;  %v1487_v38 = vpop.f32.mrb[18].mxu1  ;;  %1581 = vmatprep.subr.bf16.mxu0 %v1538_v20 }
 0x3c4   :  { %v1523_v62 = vadd.f32 %v1515_v50, %v1487_v38  ;;  %v1489_v0 = vpop.f32.mrb[19].mxu1  ;;  %1582 = vmatpush1.bf16.msra.mxu0 %v1537_v43  ;;  %v1529_v57 = vmax.f32 %v1521_v46, 0.0 }
 0x3c5   :  { %v1524_v44 = vadd.f32 %v1515_v50, %v1489_v0  ;;  %v1530_v8 = vmax.f32 %v1522_v61, 0.0 }
 0x3c6   :  { %v1531_v2 = vmax.f32 %v1523_v62, 0.0 }
 0x3c7   :  { %v1532_v45 = vmax.f32 %v1524_v44, 0.0 }
 0x3c8   :  { %v1539_v6 = vpack.c.bf16 %v1531_v2, %v1529_v57 }
 0x3c9   :  { %v1540_v49 = vpack.c.bf16 %v1532_v45, %v1530_v8 }
 0x3cb   :  { %1583 = vmatprep.subr.bf16.mxu0 %v1540_v49 }
 0x3cc   :  { %1584 = vmatpush1.bf16.msra.mxu0 %v1539_v6 }
 0x3cf   :  { %1793 = vmatmul.mubr.msk.bf16.vlgmr.msra.gmra.mrb[8].mxu0 %vm756_vm2, %v1860_v9 }
 0x3d0   :  { %1623 = vmatprep.mubr.bf16.mxu0 %v1902_v1 }
 0x3d7   :  { %1794 = vmatmul.mubr.msk.bf16.gmra.mrb[12].mxu0 %vm756_vm2, %v1861_v10 }
 0x3d8   :  { %1688 = vmatprep.mubr.bf16.mxu0 %v1902_v1  ;;  %v1563_v1 = vpop.permute.xlu1 %1562 }
 0x4a2   :  { %v1615_v11 = vpop.f32.mrb[8].mxu0 }
 0x4a3   :  { %v1616_v63 = vadd.f32 %v1615_v11, %v1548_v25  ;;  %v1617_v32 = vpop.f32.mrb[9].mxu0 }
 0x4a4   :  { %v1618_v51 = vadd.f32 %v1617_v32, %v1548_v25  ;;  %v1619_v12 = vpop.f32.mrb[10].mxu0 }
 0x4a5   :  { %v1620_v53 = vadd.f32 %v1619_v12, %v1553_v47  ;;  %v1621_v55 = vpop.f32.mrb[11].mxu0  ;;  %v1634_v15 = vmax.f32 %v1616_v63, 0.0 }
 0x4a6   :  { %v1622_v13 = vadd.f32 %v1621_v55, %v1553_v47  ;;  %v1635_v56 = vmax.f32 %v1618_v51, 0.0 }
 0x4a7   :  { %v1636_v59 = vmax.f32 %v1620_v53, 0.0 }
 0x4a8   :  { %v1637_v14 = vmax.f32 %v1622_v13, 0.0 }
 0x4a9   :  { %v1643_v40 = vpack.c.bf16 %v1636_v59, %v1634_v15 }
 0x4aa   :  { %v1644_v48 = vpack.c.bf16 %v1637_v14, %v1635_v56  ;;  %v1625_v52 = vpop.f32.mrb[12].mxu0 }
 0x4ab   :  { %v1626_v3 = vadd.f32 %v1625_v52, %v2384_v26  ;;  %v1627_v54 = vpop.f32.mrb[13].mxu0 }
 0x4ac   :  { %v1628_v24 = vadd.f32 %v1627_v54, %v2384_v26  ;;  %v1629_v16 = vpop.f32.mrb[14].mxu0  ;;  %1656 = vmatprep.subr.bf16.mxu0 %v1644_v48  ;;  %v1651_v26 = vpop.permute.xlu1 %1650 }
 0x4ad   :  { %v1630_v4 = vadd.f32 %v1629_v16, %v1563_v1  ;;  %v1631_v25 = vpop.f32.mrb[15].mxu0  ;;  %1657 = vmatpush1.bf16.msra.mxu0 %v1643_v40  ;;  %v1638_v28 = vmax.f32 %v1626_v3, 0.0 }
 0x4ae   :  { %v1632_v60 = vadd.f32 %v1631_v25, %v1563_v1  ;;  %v1639_v5 = vmax.f32 %v1628_v24, 0.0 }
 0x4af   :  { %v1640_v23 = vmax.f32 %v1630_v4, 0.0 }
 0x4b0   :  { %v1641_v58 = vmax.f32 %v1632_v60, 0.0 }
 0x4b1   :  { %v1645_v7 = vpack.c.bf16 %v1640_v23, %v1638_v28 }
 0x4b2   :  { %v1646_v29 = vpack.c.bf16 %v1641_v58, %v1639_v5 }
 0x4b4   :  { %1658 = vmatprep.subr.bf16.mxu0 %v1646_v29 }
 0x4b5   :  { %1659 = vmatpush1.bf16.msra.mxu0 %v1645_v7 }
 0x4b8   :  { %1795 = vmatmul.mubr.msk.bf16.vlgmr.msra.gmra.mrb[16].mxu0 %vm756_vm2, %v1642_v33 }
 0x58b   :  { %v1690_v34 = vpop.f32.mrb[16].mxu0 }
 0x58c   :  { %v1691_v31 = vadd.f32 %v1690_v34, %v1651_v26  ;;  %v1692_v35 = vpop.f32.mrb[17].mxu0 }
 0x58d   :  { %v1693_v27 = vadd.f32 %v1692_v35, %v1651_v26  ;;  %v1694_v30 = vpop.f32.mrb[18].mxu0 }
 0x58e   :  { %v1695_v36 = vpop.f32.mrb[19].mxu0 }
 0x58f   :  { %v1699_v39 = vcombine.low %v1691_v31, %v1693_v27 }
 0x591   :  { %1796 = vst.sshfl [vmem:[#allocation2 + $0x4] sm:$0x33 pattern:$0x76325410] %v1699_v39 }
 0x592   :  { %1889 = shalt.err (!%p1886_p4)
}
 0x593   :  { %s1890_s0 = scalar_lea.hbm %s2423_s9, 128 }
 0x594   :  { %p1891_p5 = scmp.ne.s32.totalorder %s2423_s9, %s1890_s0  ;;  %p1894_p6 = scmp.lt.u32.totalorder %s1890_s0, %s2423_s9 }
 0x596   :  { %p1896_p7 = pnand %p1894_p6, %p1891_p5 }
 0x598   :  { %1899 = shalt.err (!%p1896_p7)
}
 0x599   :  { %s1912_s2 = smov 64   ;;  %s1913_s8 = smov 4  }
 0x59a   :  { %1721 = dma.vmem_to_hbm [thread:$0]  %s1716_s24, 128, %s2423_s9, [#allocation3], %s1912_s2, %s1912_s2, %s1913_s8  }
 0x59b   :  { %1900 = dma.done.wait [#allocation3], 128  }
 0x59c   :  { %1901 = vsyncadd [#allocation3], 4294967168 }
 0x59d   :  { %1725 = vsyncpa [#allocation3], 1 }

// kernel: tpu_custom_call.1
= control target key start
LH: loop header
LB: loop body
LE: loop exit
PB: predicated region body
PF: predicated region fallthrough
CT: control target
= control target key end

     0   :  { %v1902_v1 = vmov 0   ;;  %v1903_v2 = vmov 2   ;;  %v1904_v3 = vmov 1   ;;  %s2414_s0 = inlined_call_operand.vmem [shape: f32[3,256], index: 0, kind: input, shape index: {}]   ;;  %s2415_s1 = inlined_call_operand.vmem [shape: f32[2,8,3], index: 1, kind: input, shape index: {}]   ;;  %s2416_s2 = inlined_call_operand.vmem [shape: f32[2,32,1], index: 2, kind: input, shape index: {}]   ;;  %s2417_s3 = inlined_call_operand.vmem [shape: bf16[32,8], index: 3, kind: input, shape index: {}]   ;;  %s2418_s4 = inlined_call_operand.vmem [shape: bf16[32,8], index: 4, kind: input, shape index: {}]   ;;  %s2419_s5 = inlined_call_operand.vmem [shape: bf16[32,32], index: 5, kind: input, shape index: {}]   ;;  %s2420_s6 = inlined_call_operand.vmem [shape: f32[32,1], index: 6, kind: input, shape index: {}]   ;;  %s2421_s7 = inlined_call_operand.vmem [shape: bf16[2,32], index: 7, kind: input, shape index: {}]   ;;  %s2422_s8 = inlined_call_operand.vmem [shape: f32[2,1], index: 8, kind: input, shape index: {}]   ;;  %s2423_s9 = inlined_call_operand.hbm [shape: f32[2,2,256], index: 9, kind: output, shape index: {}]  }
   0x1   :  { %v39_v0 = vld [vmem:[%s2415_s1] sm:$0xff]  ;;  %1841 = vset.pattern.permute.xlu0 %v1902_v1  ;;  %1843 = vset.pattern.permute.xlu1 %v1903_v2 }
   0x2   :  { %42 = vperm.xlu0 %1841, %v39_v0   ;;  %78 = vperm.xlu1 %1843, %v39_v0  }
   0x3   :  { %578 = vmatprep.mubr.bf16.mxu0 %v1902_v1  ;;  %795 = vmatprep.mubr.bf16.mxu1 %v1902_v1 }
   0x6   :  { %1842 = vset.pattern.permute.xlu0 %v1904_v3  ;;  %1844 = vset.pattern.permute.xlu1 %v1902_v1 }
   0x7   :  { %59 = vperm.xlu0 %1842, %v39_v0  }
   0xb   :  { %1845 = vset.pattern.permute.xlu0 %v1902_v1 }
   0xc   :  { %14 = vsyncpa [#allocation3], 0  ;;  %v46_v4 = vlaneseq  ;;  %v674_v5 = vld [vmem:[%s2416_s2] sm:$0xff]  ;;  %v675_v6 = vld [vmem:[%s2416_s2 + $0x8] sm:$0xff]  ;;  %v1905_v58 = vmov 2102212464  }
   0xd   :  { %680 = vperm.xlu1 %1844, %v674_v5   ;;  %v34_v10 = vld [vmem:[%s2414_s0] ss:$4 sm:$0x3]  ;;  %v677_v11 = vld [vmem:[%s2416_s2 + $0x18] sm:$0xff]  ;;  %v676_v12 = vld [vmem:[%s2416_s2 + $0x10] sm:$0xff]  ;;  %s1911_s23 = smov [#allocation2]  }
   0xe   :  { %v47_v7 = vshrl.u32 %v46_v4, 7  ;;  %v1726_v13 = vld [vmem:[%s2414_s0 + $0x1] ss:$4 sm:$0x3]  ;;  %690 = vperm.xlu0 %1845, %v676_v12   ;;  %v1760_v16 = vld [vmem:[%s2415_s1 + $0x8] sm:$0xff]  ;;  %s1715_s24 = sshll.u32 %s1911_s23, 4  ;;  %s1716_s24 = int_to_ptr.vmem [resolvable:$true] %s1715_s24 }
   0xf   :  { %v1727_v14 = vld [vmem:[%s2414_s0 + $0x2] ss:$4 sm:$0x3]  ;;  %v1906_v60 = vmov 920167782   ;;  %s1878_s25 = scalar_lea.vmem %s1716_s24, 128  ;;  %p1883_p1 = scmp.lt.s32.totalorder %s1716_s24, %s1716_s24 }
  0x10   :  { %v48_v8 = vsub.s32 0, %v47_v7  ;;  %v52_v9 = vsub.s32 1, %v47_v7  ;;  %v1907_v63 = vmov 683565275   ;;  %v1909_v5 = vmov 2475754826   ;;  %p1879_p0 = scmp.ne.s32.totalorder %s1716_s24, %s1878_s25  ;;  %p1884_p2 = scmp.lt.s32.totalorder %s1878_s25, %s1878_s25 }
  0x11   :  { %685 = vperm.xlu1 %1844, %v675_v6   ;;  %v1910_v7 = vmov 2131351028  }
  0x12   :  { %v1996_v17 = vrot.slane %v34_v10, %v48_v8  ;;  %v1998_v18 = vrot.slane %v34_v10, %v52_v9  ;;  %v2000_v19 = vrot.slane %v1726_v13, %v48_v8  ;;  %v2002_v20 = vrot.slane %v1726_v13, %v52_v9  ;;  %1846 = vset.pattern.permute.xlu0 %v1904_v3  ;;  %p1885_p3 = por %p1884_p2, %p1883_p1 }
  0x13   :  { %v2004_v21 = vrot.slane %v1727_v14, %v48_v8  ;;  %v2006_v22 = vrot.slane %v1727_v14, %v52_v9  ;;  %901 = vperm.xlu0 %1846, %v1760_v16   ;;  %v1908_v3 = vmov 1326507024  }
  0x14   :  { %p1886_p4 = pnand %p1885_p3, %p1879_p0 }
  0x15   :  { %695 = vperm.xlu1 %1844, %v677_v11  }
  0x17   :  { %1849 = vset.pattern.permute.xlu0 %v1902_v1 }
  0x19   :  { %895 = vperm.xlu1 %1844, %v1760_v16  }
  0x1d   :  { %1847 = vset.pattern.permute.xlu1 %v1903_v2 }
  0x1e   :  { %909 = vperm.xlu1 %1847, %v1760_v16  }
  0x22   :  { %1848 = vset.pattern.permute.xlu1 %v1902_v1 }
  0x81   :  { %v43_v15 = vpop.permute.xlu0 %42  ;;  %v79_v23 = vpop.permute.xlu1 %78 }
  0x82   :  { %v56_v24 = vmul.f32 %v1996_v17, %v43_v15  ;;  %v57_v25 = vmul.f32 %v1998_v18, %v43_v15  ;;  %v92_v29 = vmul.f32 %v2004_v21, %v79_v23  ;;  %v93_v30 = vmul.f32 %v2006_v22, %v79_v23 }
  0x86   :  { %v60_v26 = vpop.permute.xlu0 %59 }
  0x87   :  { %v73_v27 = vmul.f32 %v2000_v19, %v60_v26  ;;  %v74_v28 = vmul.f32 %v2002_v20, %v60_v26 }
  0x89   :  { %v75_v31 = vadd.f32 %v73_v27, %v56_v24  ;;  %v76_v32 = vadd.f32 %v74_v28, %v57_v25 }
  0x8b   :  { %v2015_v33 = vadd.f32 %v92_v29, %v75_v31  ;;  %v2017_v34 = vadd.f32 %v93_v30, %v76_v32 }
  0x8d   :  { %v99_v35 = vand.u32 2139095040, %v2015_v33  ;;  %v203_v36 = vand.u32 2139095040, %v2017_v34  ;;  %v200_v37 = vand.u32 2147483647, %v2017_v34  ;;  %v96_v38 = vand.u32 2147483647, %v2015_v33 }
  0x8e   :  { %vm202_vm14 = vcmp.lt.s32.totalorder %v2017_v34, 0 }
  0x8f   :  { %v100_v39 = vshrl.u32 %v99_v35, 23  ;;  %v204_v40 = vshrl.u32 %v203_v36, 23  ;;  %v207_v41 = vand.u32 8388607, %v200_v37  ;;  %v103_v44 = vand.u32 8388607, %v96_v38 }
  0x90   :  { %vm201_vm15 = vcmp.le.f32.partialorder %v200_v37, 0.7853982 }
  0x91   :  { %v1728_v42 = vadd.s32 4294967169, %v100_v39  ;;  %v1732_v43 = vadd.s32 4294967169, %v204_v40  ;;  %v208_v47 = vor.u32 8388608, %v207_v41  ;;  %v104_v48 = vor.u32 8388608, %v103_v44 }
  0x93   :  { %v106_v45 = vadd.s32 1, %v1728_v42  ;;  %v210_v46 = vadd.s32 1, %v1732_v43  ;;  %v2028_v53 = vshll.u32 %v208_v47, 8  ;;  %v2032_v57 = vshll.u32 %v104_v48, 8 }
  0x95   :  { %vm107_vm0 = vcmp.gt.s32.totalorder %v106_v45, 0  ;;  %vm211_vm1 = vcmp.gt.s32.totalorder %v210_v46, 0 }
  0x96   :  { %v108_v49 = vsel %vm107_vm0, %v106_v45, 0  ;;  %v212_v50 = vsel %vm211_vm1, %v210_v46, 0  ;;  %vm98_vm0 = vcmp.lt.s32.totalorder %v2015_v33, 0  ;;  %vm97_vm1 = vcmp.le.f32.partialorder %v96_v38, 0.7853982 }
  0x97   :  { %v110_v51 = vand.u32 31, %v108_v49  ;;  %v214_v52 = vand.u32 31, %v212_v50  ;;  %v2030_v54 = vshrl.u32 %v108_v49, 5  ;;  %v213_v56 = vshrl.u32 %v212_v50, 5 }
  0x99   :  { %v111_v55 = vsub.s32 32, %v110_v51  ;;  %v122_v59 = vshll.u32 %v1905_v58, %v110_v51  ;;  %v125_v61 = vshll.u32 %v1906_v60, %v110_v51  ;;  %v215_v62 = vsub.s32 32, %v214_v52 }
  0x9a   :  { %v217_v0 = vshll.u32 %v1907_v63, %v214_v52  ;;  %v220_v6 = vshll.u32 %v1909_v5, %v214_v52  ;;  %v223_v8 = vshll.u32 %v1910_v7, %v214_v52  ;;  %v226_v12 = vshll.u32 %v1905_v58, %v214_v52 }
  0x9b   :  { %v123_v2 = vshrl.u32 %v1906_v60, %v111_v55  ;;  %v126_v4 = vshrl.u32 %v1908_v3, %v111_v55  ;;  %v218_v9 = vshrl.u32 %v1909_v5, %v215_v62  ;;  %v221_v10 = vshrl.u32 %v1910_v7, %v215_v62 }
  0x9c   :  { %v224_v11 = vshrl.u32 %v1905_v58, %v215_v62  ;;  %v216_v13 = vshrl.u32 %v1907_v63, %v215_v62  ;;  %v227_v14 = vshrl.u32 %v1906_v60, %v215_v62  ;;  %v229_v15 = vshll.u32 %v1906_v60, %v214_v52 }
  0x9d   :  { %v230_v16 = vshrl.u32 %v1908_v3, %v215_v62  ;;  %v124_v23 = vor.u32 %v123_v2, %v122_v59  ;;  %v219_v24 = vor.u32 %v218_v9, %v217_v0  ;;  %v222_v25 = vor.u32 %v221_v10, %v220_v6 }
  0x9e   :  { %v225_v26 = vor.u32 %v224_v11, %v223_v8  ;;  %v127_v27 = vor.u32 %v126_v4, %v125_v61  ;;  %v228_v28 = vor.u32 %v227_v14, %v226_v12  ;;  %vm232_vm2 = vcmp.lt.s32.totalorder %v213_v56, 1 }
  0x9f   :  { %v231_v29 = vor.u32 %v230_v16, %v229_v15  ;;  %vm131_vm3 = vcmp.lt.s32.totalorder %v2030_v54, 4  ;;  %vm234_vm4 = vcmp.lt.s32.totalorder %v213_v56, 3  ;;  %vm235_vm5 = vcmp.lt.s32.totalorder %v213_v56, 4 }
  0xa0   :  { %v236_v30 = vsel %vm232_vm2, %v216_v13, %v219_v24  ;;  %v237_v31 = vsel %vm235_vm5, %v225_v26, 2102212464  ;;  %v240_v32 = vsel %vm232_vm2, %v219_v24, %v222_v25  ;;  %v241_v35 = vsel %vm235_vm5, %v228_v28, 920167782 }
  0xa1   :  { %v244_v36 = vsel %vm232_vm2, %v222_v25, %v225_v26  ;;  %vm233_vm6 = vcmp.lt.s32.totalorder %v213_v56, 2  ;;  %v238_v39 = vsel %vm234_vm4, %v222_v25, %v237_v31  ;;  %v242_v40 = vsel %vm234_vm4, %v225_v26, %v241_v35 }
  0xa2   :  { %v245_v41 = vsel %vm235_vm5, %v231_v29, 1326507024  ;;  %v137_v42 = vsel %vm131_vm3, %v124_v23, 920167782  ;;  %v141_v43 = vsel %vm131_vm3, %v127_v27, 1326507024  ;;  %v243_v44 = vsel %vm233_vm6, %v240_v32, %v242_v40 }
  0xa3   :  { %v246_v45 = vsel %vm234_vm4, %v228_v28, %v245_v41  ;;  %v239_v46 = vsel %vm233_vm6, %v236_v30, %v238_v39  ;;  %v2055_v48 = vmul.u32.u64.low %v2028_v53, %v243_v44  ;;  %v2056_v49 = vmul.u32.u64.high %v2028_v53, %v243_v44, %v2055_v48 }
  0xa4   :  { %v247_v47 = vsel %vm233_vm6, %v244_v36, %v246_v45  ;;  %v113_v56 = vshll.u32 %v1907_v63, %v110_v51  ;;  %v114_v59 = vshrl.u32 %v1909_v5, %v111_v55  ;;  %v116_v61 = vshll.u32 %v1909_v5, %v110_v51 }
  0xa5   :  { %v2059_v50 = vmul.u32.u64.low %v2028_v53, %v247_v47  ;;  %v2060_v52 = vmul.u32.u64.high %v2028_v53, %v247_v47, %v2059_v50  ;;  %v117_v62 = vshrl.u32 %v1910_v7, %v111_v55  ;;  %v119_v0 = vshll.u32 %v1910_v7, %v110_v51 }
  0xa6   :  { %v120_v2 = vshrl.u32 %v1905_v58, %v111_v55  ;;  %v255_v4 = vmul.u32 %v2028_v53, %v239_v46  ;;  %v112_v6 = vshrl.u32 %v1907_v63, %v111_v55  ;;  %v115_v8 = vor.u32 %v114_v59, %v113_v56 }
  0xa7   :  { %vm128_vm7 = vcmp.lt.s32.totalorder %v2030_v54, 1  ;;  %v258_v9 = vadd.s32 1, %v2056_v49  ;;  %v118_v10 = vor.u32 %v117_v62, %v116_v61  ;;  %vm130_vm8 = vcmp.lt.s32.totalorder %v2030_v54, 3 }
  0xa8   :  { %v121_v11 = vor.u32 %v120_v2, %v119_v0  ;;  %vm257_vm9 = vc.u32 %v2060_v52, %v2055_v48  ;;  %vm129_vm10 = vcmp.lt.s32.totalorder %v2030_v54, 2  ;;  %v132_v51 = vsel %vm128_vm7, %v112_v6, %v115_v8 }
  0xa9   :  { %v142_v12 = vsel %vm130_vm8, %v124_v23, %v141_v43  ;;  %v259_v53 = vsel %vm257_vm9, %v258_v9, %v2056_v49  ;;  %v136_v13 = vsel %vm128_vm7, %v115_v8, %v118_v10  ;;  %v256_v61 = vadd.s32 %v2055_v48, %v2060_v52 }
  0xaa   :  { %v133_v55 = vsel %vm131_vm3, %v121_v11, 2102212464  ;;  %v138_v14 = vsel %vm130_vm8, %v121_v11, %v137_v42  ;;  %v260_v15 = vadd.s32 %v259_v53, %v255_v4  ;;  %v140_v25 = vsel %vm128_vm7, %v118_v10, %v121_v11 }
  0xab   :  { %v134_v16 = vsel %vm130_vm8, %v118_v10, %v133_v55  ;;  %v139_v24 = vsel %vm129_vm10, %v136_v13, %v138_v14  ;;  %v143_v26 = vsel %vm129_vm10, %v140_v25, %v142_v12  ;;  %vm292_vm5 = vweird.f32 %v2017_v34 }
  0xac   :  { %v2085_v27 = vmul.u32.u64.low %v2032_v57, %v139_v24  ;;  %v2086_v28 = vmul.u32.u64.high %v2032_v57, %v139_v24, %v2085_v27  ;;  %v261_v23 = vadd.s32 536870912, %v260_v15  ;;  %v135_v31 = vsel %vm129_vm10, %v132_v51, %v134_v16 }
  0xad   :  { %v2089_v29 = vmul.u32.u64.low %v2032_v57, %v143_v26  ;;  %v2090_v30 = vmul.u32.u64.high %v2032_v57, %v143_v26, %v2089_v29  ;;  %v151_v39 = vmul.u32 %v2032_v57, %v135_v31  ;;  %vm539_vm6 = vcmask 1043456  }
  0xae   :  { %v262_v32 = vshrl.u32 %v261_v23, 30  ;;  %v154_v35 = vadd.s32 1, %v2086_v28 }
  0xaf   :  { %vm153_vm11 = vc.u32 %v2090_v30, %v2085_v27  ;;  %v152_v13 = vadd.s32 %v2085_v27, %v2090_v30 }
  0xb0   :  { %v263_v36 = vshll.u32 %v262_v32, 30  ;;  %v155_v54 = vsel %vm153_vm11, %v154_v35, %v2086_v28  ;;  %v286_v29 = vsub.s32 4, %v262_v32 }
  0xb1   :  { %v156_v41 = vadd.s32 %v155_v54, %v151_v39 }
  0xb2   :  { %v264_v40 = vsub.s32 %v260_v15, %v263_v36  ;;  %v287_v36 = vsel %vm202_vm14, %v286_v29, %v262_v32  ;;  %v1850_v29 = vld [vmem:[%s2418_s4] sm:$0xff]  }
  0xb3   :  { %v157_v43 = vadd.s32 536870912, %v156_v41 }
  0xb4   :  { %v266_v42 = vsub.s32 0, %v264_v40 }
  0xb5   :  { %v158_v45 = vshrl.u32 %v157_v43, 30 }
  0xb6   :  { %v1733_v44 = vmin.u32 %v266_v42, %v264_v40 }
  0xb7   :  { %v159_v47 = vshll.u32 %v158_v45, 30  ;;  %v182_v54 = vsub.s32 4, %v158_v45 }
  0xb8   :  { %v268_v46 = vclz %v1733_v44 }
  0xb9   :  { %v160_v50 = vsub.s32 %v156_v41, %v159_v47  ;;  %v183_v42 = vsel %vm98_vm0, %v182_v54, %v158_v45  ;;  %v725_v54 = vld [vmem:[%s2420_s6 + $0x18] sm:$0xff] }
  0xba   :  { %v1734_v49 = vadd.s32 4294967294, %v268_v46 }
  0xbb   :  { %v162_v59 = vsub.s32 0, %v160_v50 }
  0xbc   :  { %vm1735_vm12 = vcmp.lt.s32.totalorder %v1734_v49, 0 }
  0xbd   :  { %v271_v56 = vsel %vm1735_vm12, 0, %v1734_v49  ;;  %v1729_v0 = vmin.u32 %v162_v59, %v160_v50  ;;  %v185_v49 = vsel %vm97_vm1, 0, %v183_v42  ;;  %v829_v42 = vld [vmem:[%s2422_s8] sm:$0x3] }
  0xbe   :  { %v272_v57 = vsub.s32 32, %v271_v56  ;;  %v276_v62 = vsub.s32 4294967266, %v271_v56  ;;  %v273_v2 = vshll.u32 %v264_v40, %v271_v56  ;;  %v289_v40 = vsel %vm201_vm15, 0, %v287_v36  ;;  %v724_v36 = vld [vmem:[%s2420_s6 + $0x10] sm:$0xff] }
  0xbf   :  { %v164_v8 = vclz %v1729_v0  ;;  %v500_v43 = vand.u32 3, %v289_v40  ;;  %v293_v47 = vadd.s32 3, %v289_v40  ;;  %v1789_v40 = vld [vmem:[%s2416_s2 + $0x30] sm:$0xff] }
  0xc0   :  { %v274_v4 = vshrl.u32 %v256_v61, %v272_v57  ;;  %v277_v6 = vadd.s32 127, %v276_v62  ;;  %v189_v61 = vadd.s32 3, %v185_v49 }
  0xc1   :  { %v1730_v11 = vadd.s32 4294967294, %v164_v8  ;;  %vm505_vm2 = vcmp.eq.s32.totalorder %v500_v43, 2  ;;  %vm502_vm3 = vcmp.eq.s32.totalorder %v500_v43, 0  ;;  %v294_v57 = vand.u32 3, %v293_v47 }
  0xc2   :  { %v275_v9 = vor.u32 %v274_v4, %v273_v2  ;;  %v278_v10 = vshll.u32 %v277_v6, 23  ;;  %vm501_vm4 = vcmp.lt.s32.totalorder %v500_v43, 2  ;;  %v190_v2 = vand.u32 3, %v189_v61  ;;  %v1647_v43 = vld [vmem:[%s2422_s8] sm:$0x3] }
  0xc3   :  { %vm1731_vm13 = vcmp.lt.s32.totalorder %v1730_v11, 0  ;;  %v397_v4 = vand.u32 3, %v185_v49  ;;  %vm296_vm7 = vcmp.eq.s32.totalorder %v294_v57, 0  ;;  %vm299_vm8 = vcmp.eq.s32.totalorder %v294_v57, 2 }
  0xc4   :  { %v279_v51 = vor.u32 4788187, %v278_v10  ;;  %v282_v53 = vcvt.s32.f32 %v275_v9  ;;  %v167_v55 = vsel %vm1731_vm13, 0, %v1730_v11  ;;  %vm295_vm9 = vcmp.lt.s32.totalorder %v294_v57, 2 }
  0xc5   :  { %v168_v14 = vsub.s32 32, %v167_v55  ;;  %v172_v15 = vsub.s32 4294967266, %v167_v55  ;;  %v169_v52 = vshll.u32 %v160_v50, %v167_v55  ;;  %vm195_vm10 = vcmp.eq.s32.totalorder %v190_v2, 2 }
  0xc6   :  { %v280_v12 = vand.u32 2147483647, %v279_v51  ;;  %vm399_vm11 = vcmp.eq.s32.totalorder %v397_v4, 0  ;;  %vm402_vm12 = vcmp.eq.s32.totalorder %v397_v4, 2  ;;  %vm192_vm13 = vcmp.eq.s32.totalorder %v190_v2, 0 }
  0xc7   :  { %v170_v16 = vshrl.u32 %v152_v13, %v168_v14  ;;  %v173_v24 = vadd.s32 127, %v172_v15 }
  0xc8   :  { %v283_v48 = vmul.f32 %v282_v53, %v280_v12 }
  0xc9   :  { %v171_v26 = vor.u32 %v170_v16, %v169_v52  ;;  %v174_v28 = vshll.u32 %v173_v24, 23 }
  0xca   :  { %v284_v25 = vxor.u32 2147483648, %v283_v48 }
  0xcb   :  { %v175_v35 = vor.u32 4788187, %v174_v28  ;;  %v178_v30 = vcvt.s32.f32 %v171_v26 }
  0xcc   :  { %v285_v23 = vsel %vm202_vm14, %v284_v25, %v283_v48  ;;  %vm191_vm14 = vcmp.lt.s32.totalorder %v190_v2, 2 }
  0xcd   :  { %v288_v31 = vsel %vm201_vm15, %v2017_v34, %v285_v23  ;;  %v176_v27 = vand.u32 2147483647, %v175_v35  ;;  %vm398_vm15 = vcmp.lt.s32.totalorder %v397_v4, 2  ;;  %v1851_v34 = vld [vmem:[%s2418_s4 + $0x8] sm:$0xff]   ;;  %v691_v4 = vpop.permute.xlu0 %690 }
  0xce   :  { %1862 = vcosq.f32 %v288_v31  ;;  %v1853_v35 = vld [vmem:[%s2417_s3 + $0x8] sm:$0xff]  }
  0xcf   :  { %1864 = vsinq.f32 %v288_v31  ;;  %v179_v39 = vmul.f32 %v178_v30, %v176_v27  ;;  %v1852_v31 = vld [vmem:[%s2417_s3] sm:$0xff]   ;;  %v723_v30 = vld [vmem:[%s2420_s6 + $0x8] sm:$0xff] }
  0xd0   :  { %v722_v27 = vld [vmem:[%s2420_s6] sm:$0xff]  ;;  %733 = vperm.xlu0 %1849, %v723_v30  }
  0xd1   :  { %v180_v41 = vxor.u32 2147483648, %v179_v39  ;;  %728 = vperm.xlu1 %1848, %v722_v27  }
  0xd3   :  { %v181_v37 = vsel %vm98_vm0, %v180_v41, %v179_v39  ;;  %vm188_vm0 = vweird.f32 %v2015_v33  ;;  %v1787_v39 = vld [vmem:[%s2416_s2 + $0x20] sm:$0xff]  ;;  %v1788_v41 = vld [vmem:[%s2416_s2 + $0x28] sm:$0xff] }
  0xd4   :  { %v184_v44 = vsel %vm97_vm1, %v2015_v33, %v181_v37  ;;  %vm532_vm1 = vcmask 64512   ;;  %1499 = vperm.xlu0 %1849, %v1787_v39   ;;  %v1790_v37 = vld [vmem:[%s2416_s2 + $0x38] sm:$0xff] }
  0xd5   :  { %1866 = vcosq.f32 %v184_v44  ;;  %738 = vperm.xlu1 %1848, %v724_v36  }
  0xd6   :  { %1868 = vsinq.f32 %v184_v44  ;;  %v681_v44 = vpop.permute.xlu1 %680 }
  0xd8   :  { %v1863_v46 = vpop.eup %1862  ;;  %1509 = vperm.xlu0 %1849, %v1789_v40  }
  0xd9   :  { %v1865_v32 = vpop.eup %1864  ;;  %v300_v50 = vxor.u32 2147483648, %v1863_v46  ;;  %743 = vperm.xlu1 %1848, %v725_v54  }
  0xda   :  { %v297_v56 = vxor.u32 2147483648, %v1865_v32 }
  0xdb   :  { %v507_v59 = vsel %vm505_vm2, %v300_v50, %v1865_v32  ;;  %v301_v9 = vsel %vm299_vm8, %v300_v50, %v1865_v32  ;;  %v686_v32 = vpop.permute.xlu1 %685  ;;  %vm756_vm2 = vcmask 261120  }
  0xdc   :  { %v504_v38 = vsel %vm502_vm3, %v1863_v46, %v297_v56  ;;  %v298_v8 = vsel %vm296_vm7, %v1863_v46, %v297_v56  ;;  %1547 = vperm.xlu0 %1849, %v722_v27  }
  0xdd   :  { %v508_v45 = vsel %vm501_vm4, %v504_v38, %v507_v59  ;;  %v302_v12 = vsel %vm295_vm9, %v298_v8, %v301_v9  ;;  %1504 = vperm.xlu1 %1848, %v1788_v41  }
  0xde   :  { %v509_v62 = vsel %vm292_vm5, nan, %v508_v45  ;;  %v303_v52 = vsel %vm292_vm5, nan, %v302_v12 }
  0xdf   :  { %v521_v0 = vpack.c.bf16 %v509_v62, %v509_v62  ;;  %v1867_v6 = vpop.eup %1866  ;;  %v515_v26 = vpack.c.bf16 %v303_v52, %v303_v52 }
  0xe0   :  { %v1869_v10 = vpop.eup %1868  ;;  %v196_v11 = vxor.u32 2147483648, %v1867_v6  ;;  %1557 = vperm.xlu0 %1849, %v724_v36  }
  0xe1   :  { %1746 = vmatprep.subr.msk.bf16.mxu0 %vm539_vm6, %v521_v0  ;;  %v193_v51 = vxor.u32 2147483648, %v1869_v10  ;;  %1514 = vperm.xlu1 %1848, %v1790_v37  }
  0xe2   :  { %v197_v53 = vsel %vm195_vm10, %v196_v11, %v1869_v10  ;;  %v404_v55 = vsel %vm402_vm12, %v196_v11, %v1869_v10  ;;  %v696_v11 = vpop.permute.xlu1 %695 }
  0xe3   :  { %v194_v13 = vsel %vm192_vm13, %v1867_v6, %v193_v51  ;;  %v401_v14 = vsel %vm399_vm11, %v1867_v6, %v193_v51 }
  0xe4   :  { %v198_v15 = vsel %vm191_vm14, %v194_v13, %v197_v53  ;;  %v405_v48 = vsel %vm398_vm15, %v401_v14, %v404_v55  ;;  %832 = vperm.xlu0 %1849, %v829_v42  }
  0xe5   :  { %v199_v16 = vsel %vm188_vm0, nan, %v198_v15  ;;  %v406_v24 = vsel %vm188_vm0, nan, %v405_v48  ;;  %1552 = vperm.xlu1 %1848, %v723_v30  }
  0xe6   :  { %v520_v25 = vpack.c.bf16 %v406_v24, %v406_v24  ;;  %v514_v28 = vpack.c.bf16 %v199_v16, %v199_v16 }
  0xe8   :  { %v541_v23 = vsel %vm539_vm6, %v520_v25, 0  ;;  %v616_v33 = vsel %vm539_vm6, %v514_v28, 0  ;;  %v1854_v25 = vld [vmem:[%s2419_s5] sm:$0xff]   ;;  %v896_v28 = vpop.permute.xlu1 %895 }
  0xe9   :  { %547 = vmatpush1.bf16.msra.mxu0 %v541_v23  ;;  %1562 = vperm.xlu1 %1848, %v725_v54   ;;  %v902_v23 = vpop.permute.xlu0 %901 }
  0xea   :  { %1751 = vmatprep.subr.msk.bf16.mxu0 %vm539_vm6, %v515_v26  ;;  %v1855_v26 = vld [vmem:[%s2419_s5 + $0x8] sm:$0xff]  }
  0xec   :  { %1747 = vmatmul.mubr.msk.bf16.vlgmr.msra.gmra.mrb[0].mxu0 %vm532_vm1, %v1850_v29  ;;  %v898_v29 = vmul.f32 %v896_v28, %v1996_v17 }
  0xed   :  { %622 = vmatpush1.bf16.msra.mxu0 %v616_v33  ;;  %588 = vmatprep.mubr.bf16.mxu0 %v1902_v1  ;;  %v904_v33 = vmul.f32 %v902_v23, %v2000_v19 }
  0xee   :  { %1650 = vperm.xlu1 %1848, %v1647_v43  }
  0xef   :  { %v906_v27 = vadd.f32 %v904_v33, %v898_v29 }
  0xf4   :  { %1748 = vmatmul.mubr.msk.bf16.gmra.mrb[4].mxu0 %vm532_vm1, %v1851_v34  ;;  %v910_v34 = vpop.permute.xlu1 %909 }
  0xf5   :  { %653 = vmatprep.mubr.bf16.mxu0 %v1902_v1  ;;  %v912_v30 = vmul.f32 %v910_v34, %v2004_v21  ;;  %v913_v39 = vmul.f32 %v910_v34, %v2006_v22 }
  0xf7   :  { %v2182_v54 = vadd.f32 %v912_v30, %v906_v27 }
  0xf9   :  { %v919_v41 = vand.u32 2139095040, %v2182_v54 }
  0xfb   :  { %v920_v19 = vshrl.u32 %v919_v41, 23 }
  0xfc   :  { %1752 = vmatmul.mubr.msk.bf16.vlgmr.msra.gmra.mrb[0].mxu0 %vm532_vm1, %v1852_v31  ;;  %v899_v31 = vmul.f32 %v896_v28, %v1998_v18 }
  0xfd   :  { %663 = vmatprep.mubr.bf16.mxu0 %v1902_v1  ;;  %v1761_v42 = vadd.s32 4294967169, %v920_v19 }
  0xff   :  { %v926_v43 = vadd.s32 1, %v1761_v42 }
 0x101   :  { %vm927_vm3 = vcmp.gt.s32.totalorder %v926_v43, 0 }
 0x102   :  { %v928_v21 = vsel %vm927_vm3, %v926_v43, 0 }
 0x104   :  { %1753 = vmatmul.mubr.msk.bf16.gmra.mrb[4].mxu0 %vm532_vm1, %v1853_v35  ;;  %v905_v35 = vmul.f32 %v902_v23, %v2002_v20 }
 0x105   :  { %1613 = vmatprep.mubr.bf16.mxu0 %v1902_v1 }
 0x106   :  { %v907_v36 = vadd.f32 %v905_v35, %v899_v31 }
 0x108   :  { %v2184_v40 = vadd.f32 %v913_v39, %v907_v36 }
 0x10a   :  { %v1023_v17 = vand.u32 2139095040, %v2184_v40 }
 0x10c   :  { %v1024_v37 = vshrl.u32 %v1023_v17, 23 }
 0x10e   :  { %v1765_v18 = vadd.s32 4294967169, %v1024_v37 }
 0x110   :  { %v1030_v20 = vadd.s32 1, %v1765_v18 }
 0x112   :  { %vm1031_vm4 = vcmp.gt.s32.totalorder %v1030_v20, 0 }
 0x1cf   :  { %v655_v46 = vpop.f32.mrb[0].mxu0 }
 0x1d0   :  { %v698_v47 = vadd.f32 %v681_v44, %v655_v46  ;;  %v657_v49 = vpop.f32.mrb[1].mxu0  ;;  %v930_v46 = vand.u32 31, %v928_v21 }
 0x1d1   :  { %v699_v50 = vadd.f32 %v681_v44, %v657_v49  ;;  %v659_v56 = vpop.f32.mrb[2].mxu0  ;;  %v1032_v44 = vsel %vm1031_vm4, %v1030_v20, 0  ;;  %vm918_vm4 = vcmp.lt.s32.totalorder %v2182_v54, 0 }
 0x1d2   :  { %v700_v59 = vadd.f32 %v686_v32, %v659_v56  ;;  %v661_v61 = vpop.f32.mrb[3].mxu0  ;;  %v706_v38 = vmax.f32 %v698_v47, 0.0  ;;  %v1034_v22 = vand.u32 31, %v1032_v44  ;;  %v916_v47 = vand.u32 2147483647, %v2182_v54 }
 0x1d3   :  { %v701_v57 = vadd.f32 %v686_v32, %v661_v61  ;;  %v707_v62 = vmax.f32 %v699_v50, 0.0  ;;  %v2189_v49 = vsub.s32 32, %v930_v46  ;;  %v2195_v56 = vshrl.u32 %v928_v21, 5 }
 0x1d4   :  { %v708_v45 = vmax.f32 %v700_v59, 0.0  ;;  %v2191_v32 = vsub.s32 32, %v1034_v22  ;;  %v923_v50 = vand.u32 8388607, %v916_v47  ;;  %v1020_v59 = vand.u32 2147483647, %v2184_v40 }
 0x1d5   :  { %v709_v0 = vmax.f32 %v701_v57, 0.0  ;;  %v942_v61 = vshll.u32 %v1905_v58, %v930_v46  ;;  %v943_v57 = vshrl.u32 %v1906_v60, %v2189_v49  ;;  %vm951_vm5 = vcmp.lt.s32.totalorder %v2195_v56, 4 }
 0x1d6   :  { %v718_v2 = vpack.c.bf16 %v708_v45, %v706_v38  ;;  %v945_v38 = vshll.u32 %v1906_v60, %v930_v46  ;;  %v946_v45 = vshrl.u32 %v1908_v3, %v2189_v49  ;;  %v924_v23 = vor.u32 8388608, %v923_v50 }
 0x1d7   :  { %v665_v6 = vpop.f32.mrb[4].mxu0  ;;  %v719_v8 = vpack.c.bf16 %v709_v0, %v707_v62  ;;  %v933_v62 = vshll.u32 %v1907_v63, %v930_v46  ;;  %v936_v0 = vshll.u32 %v1909_v5, %v930_v46  ;;  %vm948_vm8 = vcmp.lt.s32.totalorder %v2195_v56, 1 }
 0x1d8   :  { %v702_v9 = vadd.f32 %v691_v4, %v665_v6  ;;  %v667_v10 = vpop.f32.mrb[5].mxu0  ;;  %v934_v6 = vshrl.u32 %v1909_v5, %v2189_v49  ;;  %vm950_vm9 = vcmp.lt.s32.totalorder %v2195_v56, 3  ;;  %vm949_vm12 = vcmp.lt.s32.totalorder %v2195_v56, 2 }
 0x1d9   :  { %v703_v51 = vadd.f32 %v691_v4, %v667_v10  ;;  %v669_v12 = vpop.f32.mrb[6].mxu0  ;;  %763 = vmatprep.subr.bf16.mxu1 %v719_v8  ;;  %v2207_v4 = vshrl.u32 %v1032_v44, 5  ;;  %v937_v8 = vshrl.u32 %v1910_v7, %v2189_v49  ;;  %v1047_v10 = vshrl.u32 %v1906_v60, %v2191_v32 }
 0x1da   :  { %v704_v53 = vadd.f32 %v696_v11, %v669_v12  ;;  %v671_v55 = vpop.f32.mrb[7].mxu0  ;;  %764 = vmatpush1.bf16.msra.mxu1 %v718_v2  ;;  %v710_v14 = vmax.f32 %v702_v9, 0.0  ;;  %v939_v2 = vshll.u32 %v1910_v7, %v930_v46  ;;  %v1046_v9 = vshll.u32 %v1905_v58, %v1034_v22 }
 0x1db   :  { %v705_v13 = vadd.f32 %v696_v11, %v671_v55  ;;  %v711_v48 = vmax.f32 %v703_v51, 0.0  ;;  %v940_v11 = vshrl.u32 %v1905_v58, %v2189_v49  ;;  %v1049_v51 = vshll.u32 %v1906_v60, %v1034_v22 }
 0x1dc   :  { %v712_v15 = vmax.f32 %v704_v53, 0.0  ;;  %v1050_v12 = vshrl.u32 %v1908_v3, %v2191_v32  ;;  %v944_v53 = vor.u32 %v943_v57, %v942_v61  ;;  %v947_v55 = vor.u32 %v946_v45, %v945_v38 }
 0x1dd   :  { %v713_v52 = vmax.f32 %v705_v13, 0.0  ;;  %v1037_v13 = vshll.u32 %v1907_v63, %v1034_v22  ;;  %v1044_v60 = vshrl.u32 %v1905_v58, %v2191_v32  ;;  %v1027_v3 = vand.u32 8388607, %v1020_v59 }
 0x1de   :  { %v720_v16 = vpack.c.bf16 %v712_v15, %v710_v14  ;;  %v1040_v14 = vshll.u32 %v1909_v5, %v1034_v22  ;;  %v1038_v15 = vshrl.u32 %v1909_v5, %v2191_v32  ;;  %v1051_v28 = vor.u32 %v1050_v12, %v1049_v51 }
 0x1df   :  { %v721_v24 = vpack.c.bf16 %v713_v52, %v711_v48  ;;  %v1041_v48 = vshrl.u32 %v1910_v7, %v2191_v32  ;;  %v1043_v52 = vshll.u32 %v1910_v7, %v1034_v22  ;;  %vm1055_vm7 = vcmp.lt.s32.totalorder %v2207_v4, 4 }
 0x1e0   :  { %v957_v5 = vsel %vm951_vm5, %v944_v53, 920167782  ;;  %v961_v58 = vsel %vm951_vm5, %v947_v55, 1326507024  ;;  %v1039_v7 = vor.u32 %v1038_v15, %v1037_v13  ;;  %v1028_v34 = vor.u32 8388608, %v1027_v3 }
 0x1e1   :  { %765 = vmatprep.subr.bf16.mxu1 %v721_v24  ;;  %v1048_v24 = vor.u32 %v1047_v10, %v1046_v9  ;;  %v1042_v29 = vor.u32 %v1041_v48, %v1040_v14  ;;  %v1045_v33 = vor.u32 %v1044_v60, %v1043_v52  ;;  %vm1052_vm10 = vcmp.lt.s32.totalorder %v2207_v4, 1 }
 0x1e2   :  { %766 = vmatpush1.bf16.msra.mxu1 %v720_v16  ;;  %v935_v16 = vor.u32 %v934_v6, %v933_v62  ;;  %vm1054_vm11 = vcmp.lt.s32.totalorder %v2207_v4, 3  ;;  %v1065_v30 = vsel %vm1055_vm7, %v1051_v28, 1326507024  ;;  %v962_v39 = vsel %vm950_vm9, %v944_v53, %v961_v58 }
 0x1e3   :  { %v1061_v31 = vsel %vm1055_vm7, %v1048_v24, 920167782  ;;  %v964_v41 = vshll.u32 %v924_v23, 8  ;;  %vm1053_vm13 = vcmp.lt.s32.totalorder %v2207_v4, 2  ;;  %v1060_v17 = vsel %vm1052_vm10, %v1039_v7, %v1042_v29 }
 0x1e4   :  { %v1062_v19 = vsel %vm1054_vm11, %v1045_v33, %v1061_v31  ;;  %v1064_v42 = vsel %vm1052_vm10, %v1042_v29, %v1045_v33  ;;  %v1066_v18 = vsel %vm1054_vm11, %v1048_v24, %v1065_v30  ;;  %v1068_v20 = vshll.u32 %v1028_v34, 8 }
 0x1e5   :  { %1756 = vmatmul.mubr.msk.bf16.vlgmr.msra.gmra.mrb[0].mxu1 %vm756_vm2, %v1854_v25  ;;  %v938_v25 = vor.u32 %v937_v8, %v936_v0  ;;  %v1063_v21 = vsel %vm1053_vm13, %v1060_v17, %v1062_v19  ;;  %v1067_v22 = vsel %vm1053_vm13, %v1064_v42, %v1066_v18  ;;  %v932_v50 = vshrl.u32 %v1907_v63, %v2189_v49 }
 0x1e6   :  { %805 = vmatprep.mubr.bf16.mxu1 %v1902_v1  ;;  %v2282_v45 = vmul.u32.u64.low %v1068_v20, %v1063_v21  ;;  %v2283_v62 = vmul.u32.u64.high %v1068_v20, %v1063_v21, %v2282_v45  ;;  %v1036_v0 = vshrl.u32 %v1907_v63, %v2191_v32  ;;  %v1057_v8 = vsel %vm1055_vm7, %v1045_v33, 2102212464 }
 0x1e7   :  { %v956_v35 = vsel %vm948_vm8, %v935_v16, %v938_v25  ;;  %v952_v49 = vsel %vm948_vm8, %v932_v50, %v935_v16  ;;  %vm2318_vm7 = vcmp.le.f32.partialorder %v916_v47, 0.7853982 }
 0x1e8   :  { %v1056_v10 = vsel %vm1052_vm10, %v1036_v0, %v1039_v7  ;;  %v1078_v12 = vadd.s32 1, %v2283_v62 }
 0x1ed   :  { %1757 = vmatmul.mubr.msk.bf16.gmra.mrb[4].mxu1 %vm756_vm2, %v1855_v26  ;;  %v941_v26 = vor.u32 %v940_v11, %v939_v2  ;;  %v2287_v2 = vmul.u32.u64.low %v1068_v20, %v1067_v22  ;;  %v2288_v6 = vmul.u32.u64.high %v1068_v20, %v1067_v22, %v2287_v2  ;;  %v1058_v11 = vsel %vm1054_vm11, %v1042_v29, %v1057_v8 }
 0x1ee   :  { %870 = vmatprep.mubr.bf16.mxu1 %v1902_v1  ;;  %v1059_v51 = vsel %vm1053_vm13, %v1056_v10, %v1058_v11 }
 0x1ef   :  { %v958_v27 = vsel %vm950_vm9, %v941_v26, %v957_v5  ;;  %v960_v36 = vsel %vm948_vm8, %v938_v25, %v941_v26  ;;  %v953_v38 = vsel %vm951_vm5, %v941_v26, 2102212464  ;;  %vm1077_vm15 = vc.u32 %v2288_v6, %v2282_v45 }
 0x1f0   :  { %v959_v37 = vsel %vm949_vm12, %v956_v35, %v958_v27  ;;  %v963_v43 = vsel %vm949_vm12, %v960_v36, %v962_v39  ;;  %v954_v9 = vsel %vm950_vm9, %v938_v25, %v953_v38  ;;  %v1075_v13 = vmul.u32 %v1068_v20, %v1059_v51 }
 0x1f1   :  { %v2270_v44 = vmul.u32.u64.low %v964_v41, %v959_v37  ;;  %v2271_v46 = vmul.u32.u64.high %v964_v41, %v959_v37, %v2270_v44  ;;  %v2277_v61 = vmul.u32.u64.low %v964_v41, %v963_v43  ;;  %v2278_v57 = vmul.u32.u64.high %v964_v41, %v963_v43, %v2277_v61 }
 0x1f2   :  { %v955_v63 = vsel %vm949_vm12, %v952_v49, %v954_v9  ;;  %v1079_v14 = vsel %vm1077_vm15, %v1078_v12, %v2283_v62  ;;  %vm1022_vm5 = vcmp.lt.s32.totalorder %v2184_v40, 0  ;;  %vm1021_vm8 = vcmp.le.f32.partialorder %v1020_v59, 0.7853982 }
 0x1f3   :  { %v974_v32 = vadd.s32 1, %v2271_v46  ;;  %vm973_vm14 = vc.u32 %v2278_v57, %v2270_v44  ;;  %v971_v53 = vmul.u32 %v964_v41, %v955_v63  ;;  %v1080_v56 = vadd.s32 %v1079_v14, %v1075_v13 }
 0x1f4   :  { %v972_v30 = vadd.s32 %v2270_v44, %v2278_v57  ;;  %v1076_v41 = vadd.s32 %v2282_v45, %v2288_v6 }
 0x1f5   :  { %v975_v55 = vsel %vm973_vm14, %v974_v32, %v2271_v46  ;;  %v1081_v52 = vadd.s32 536870912, %v1080_v56 }
 0x1f6   :  { %v976_v15 = vadd.s32 %v975_v55, %v971_v53  ;;  %v729_v53 = vpop.permute.xlu1 %728 }
 0x1f7   :  { %v1082_v16 = vshrl.u32 %v1081_v52, 30 }
 0x1f8   :  { %v977_v48 = vadd.s32 536870912, %v976_v15 }
 0x1f9   :  { %v1083_v24 = vshll.u32 %v1082_v16, 30  ;;  %v1106_v63 = vsub.s32 4, %v1082_v16 }
 0x1fa   :  { %v978_v60 = vshrl.u32 %v977_v48, 30 }
 0x1fb   :  { %v1084_v25 = vsub.s32 %v1080_v56, %v1083_v24  ;;  %v1107_v47 = vsel %vm1022_vm5, %v1106_v63, %v1082_v16 }
 0x1fc   :  { %v979_v3 = vshll.u32 %v978_v60, 30  ;;  %v1002_v32 = vsub.s32 4, %v978_v60  ;;  %v1109_v51 = vsel %vm1021_vm8, 0, %v1107_v47 }
 0x1fd   :  { %v1086_v28 = vsub.s32 0, %v1084_v25  ;;  %v1113_v13 = vadd.s32 3, %v1109_v51  ;;  %v1320_v56 = vand.u32 3, %v1109_v51 }
 0x1fe   :  { %v980_v4 = vsub.s32 %v976_v15, %v979_v3  ;;  %v1003_v12 = vsel %vm918_vm4, %v1002_v32, %v978_v60 }
 0x1ff   :  { %v1766_v5 = vmin.u32 %v1086_v28, %v1084_v25  ;;  %v1005_v55 = vsel %vm2318_vm7, 0, %v1003_v12  ;;  %vm1322_vm9 = vcmp.eq.s32.totalorder %v1320_v56, 0  ;;  %vm1325_vm11 = vcmp.eq.s32.totalorder %v1320_v56, 2 }
 0x200   :  { %v982_v26 = vsub.s32 0, %v980_v4  ;;  %v1217_v48 = vand.u32 3, %v1005_v55  ;;  %vm1321_vm13 = vcmp.lt.s32.totalorder %v1320_v56, 2 }
 0x201   :  { %v1088_v7 = vclz %v1766_v5  ;;  %v1114_v5 = vand.u32 3, %v1113_v13 }
 0x202   :  { %v1762_v23 = vmin.u32 %v982_v26, %v980_v4  ;;  %vm1219_vm10 = vcmp.eq.s32.totalorder %v1217_v48, 0  ;;  %vm1222_vm12 = vcmp.eq.s32.totalorder %v1217_v48, 2  ;;  %vm1218_vm14 = vcmp.lt.s32.totalorder %v1217_v48, 2 }
 0x203   :  { %v1767_v33 = vadd.s32 4294967294, %v1088_v7  ;;  %v739_v7 = vpop.permute.xlu1 %738  ;;  %vm1116_vm15 = vcmp.eq.s32.totalorder %v1114_v5, 0 }
 0x204   :  { %v984_v58 = vclz %v1762_v23 }
 0x205   :  { %vm1768_vm3 = vcmp.lt.s32.totalorder %v1767_v33, 0 }
 0x206   :  { %v1763_v29 = vadd.s32 4294967294, %v984_v58  ;;  %v1091_v31 = vsel %vm1768_vm3, 0, %v1767_v33  ;;  %v1009_v58 = vadd.s32 3, %v1005_v55  ;;  %vm1112_vm3 = vweird.f32 %v2184_v40  ;;  %v824_v55 = vld [vmem:[%s2421_s7] sm:$0x1] }
 0x207   :  { %v1096_v27 = vsub.s32 4294967266, %v1091_v31  ;;  %v1092_v17 = vsub.s32 32, %v1091_v31  ;;  %v1093_v43 = vshll.u32 %v1084_v25, %v1091_v31 }
 0x208   :  { %vm1764_vm0 = vcmp.lt.s32.totalorder %v1763_v29, 0 }
 0x209   :  { %v987_v34 = vsel %vm1764_vm0, 0, %v1763_v29  ;;  %v1097_v19 = vadd.s32 127, %v1096_v27  ;;  %v1094_v20 = vshrl.u32 %v1076_v41, %v1092_v17  ;;  %vm1119_vm0 = vcmp.eq.s32.totalorder %v1114_v5, 2 }
 0x20a   :  { %v992_v35 = vsub.s32 4294967266, %v987_v34  ;;  %v988_v36 = vsub.s32 32, %v987_v34  ;;  %v989_v37 = vshll.u32 %v980_v4, %v987_v34  ;;  %v734_v4 = vpop.permute.xlu0 %733 }
 0x20b   :  { %v1098_v21 = vshll.u32 %v1097_v19, 23  ;;  %v1095_v50 = vor.u32 %v1094_v20, %v1093_v43 }
 0x20c   :  { %v993_v39 = vadd.s32 127, %v992_v35  ;;  %v990_v42 = vshrl.u32 %v972_v30, %v988_v36 }
 0x20d   :  { %v1099_v61 = vor.u32 4788187, %v1098_v21  ;;  %v1102_v44 = vcvt.s32.f32 %v1095_v50  ;;  %v744_v21 = vpop.permute.xlu1 %743  ;;  %v1010_v50 = vand.u32 3, %v1009_v58 }
 0x20e   :  { %v994_v18 = vshll.u32 %v993_v39, 23  ;;  %v991_v46 = vor.u32 %v990_v42, %v989_v37 }
 0x20f   :  { %v1100_v0 = vand.u32 2147483647, %v1099_v61 }
 0x210   :  { %v995_v22 = vor.u32 4788187, %v994_v18  ;;  %v998_v62 = vcvt.s32.f32 %v991_v46 }
 0x211   :  { %v1103_v2 = vmul.f32 %v1102_v44, %v1100_v0 }
 0x212   :  { %v996_v38 = vand.u32 2147483647, %v995_v22 }
 0x213   :  { %v1104_v45 = vxor.u32 2147483648, %v1103_v2 }
 0x214   :  { %v999_v57 = vmul.f32 %v998_v62, %v996_v38 }
 0x215   :  { %v1105_v9 = vsel %vm1022_vm5, %v1104_v45, %v1103_v2  ;;  %vm1008_vm5 = vweird.f32 %v2182_v54 }
 0x216   :  { %v1000_v8 = vxor.u32 2147483648, %v999_v57  ;;  %v1108_v11 = vsel %vm1021_vm8, %v2184_v40, %v1105_v9  ;;  %vm1015_vm8 = vcmp.eq.s32.totalorder %v1010_v50, 2  ;;  %v1856_v40 = vld [vmem:[%s2418_s4] sm:$0xff]  }
 0x218   :  { %v1001_v6 = vsel %vm918_vm4, %v1000_v8, %v999_v57  ;;  %vm1115_vm4 = vcmp.lt.s32.totalorder %v1114_v5, 2 }
 0x219   :  { %v1004_v10 = vsel %vm2318_vm7, %v2182_v54, %v1001_v6  ;;  %vm1012_vm7 = vcmp.eq.s32.totalorder %v1010_v50, 0  ;;  %v1858_v54 = vld [vmem:[%s2417_s3] sm:$0xff]  }
 0x21a   :  { %1870 = vcosq.f32 %v1004_v10 }
 0x21b   :  { %1872 = vsinq.f32 %v1004_v10 }
 0x21c   :  { %1874 = vcosq.f32 %v1108_v11 }
 0x21d   :  { %1876 = vsinq.f32 %v1108_v11 }
 0x224   :  { %v2330_v59 = vpop.eup %1870 }
 0x225   :  { %v2334_v14 = vpop.eup %1872  ;;  %v1016_v23 = vxor.u32 2147483648, %v2330_v59 }
 0x226   :  { %v1875_v52 = vpop.eup %1874  ;;  %v1013_v33 = vxor.u32 2147483648, %v2334_v14 }
 0x227   :  { %v1877_v16 = vpop.eup %1876  ;;  %v1120_v27 = vxor.u32 2147483648, %v1875_v52  ;;  %v1224_v20 = vsel %vm1222_vm12, %v1016_v23, %v2334_v14  ;;  %v1017_v51 = vsel %vm1015_vm8, %v1016_v23, %v2334_v14 }
 0x228   :  { %v1117_v35 = vxor.u32 2147483648, %v1877_v16  ;;  %v1221_v19 = vsel %vm1219_vm10, %v2330_v59, %v1013_v33  ;;  %v1014_v47 = vsel %vm1012_vm7, %v2330_v59, %v1013_v33 }
 0x229   :  { %v1327_v43 = vsel %vm1325_vm11, %v1120_v27, %v1877_v16  ;;  %v1225_v44 = vsel %vm1218_vm14, %v1221_v19, %v1224_v20  ;;  %v1121_v45 = vsel %vm1119_vm0, %v1120_v27, %v1877_v16  ;;  %v1500_v16 = vpop.permute.xlu0 %1499  ;;  %v1505_v27 = vpop.permute.xlu1 %1504 }
 0x22a   :  { %v1324_v18 = vsel %vm1322_vm9, %v1875_v52, %v1117_v35  ;;  %v1118_v8 = vsel %vm1116_vm15, %v1875_v52, %v1117_v35  ;;  %v1226_v11 = vsel %vm1008_vm5, nan, %v1225_v44  ;;  %vm1011_vm9 = vcmp.lt.s32.totalorder %v1010_v50, 2 }
 0x22b   :  { %v1328_v0 = vsel %vm1321_vm13, %v1324_v18, %v1327_v43  ;;  %v1122_v32 = vsel %vm1115_vm4, %v1118_v8, %v1121_v45 }
 0x22c   :  { %v1329_v10 = vsel %vm1112_vm3, nan, %v1328_v0  ;;  %v1123_v13 = vsel %vm1112_vm3, nan, %v1122_v32 }
 0x22d   :  { %v1341_v12 = vpack.c.bf16 %v1329_v10, %v1329_v10  ;;  %v1335_v56 = vpack.c.bf16 %v1123_v13, %v1123_v13  ;;  %v1515_v50 = vpop.permute.xlu1 %1514  ;;  %v1861_v10 = vld [vmem:[%s2419_s5 + $0x8] sm:$0xff]  }
 0x2b8   :  { %v797_v15 = vpop.f32.mrb[0].mxu1 }
 0x2b9   :  { %v798_v3 = vadd.f32 %v797_v15, %v729_v53  ;;  %v799_v24 = vpop.f32.mrb[1].mxu1  ;;  %v1018_v15 = vsel %vm1011_vm9, %v1014_v47, %v1017_v51  ;;  %v1553_v47 = vpop.permute.xlu1 %1552 }
 0x2ba   :  { %v800_v25 = vadd.f32 %v799_v24, %v729_v53  ;;  %v801_v26 = vpop.f32.mrb[2].mxu1  ;;  %v1340_v53 = vpack.c.bf16 %v1226_v11, %v1226_v11  ;;  %v1019_v14 = vsel %vm1008_vm5, nan, %v1018_v15  ;;  %v1859_v24 = vld [vmem:[%s2417_s3 + $0x8] sm:$0xff]  }
 0x2bb   :  { %v802_v60 = vadd.f32 %v801_v26, %v734_v4  ;;  %v803_v28 = vpop.f32.mrb[3].mxu1  ;;  %v816_v34 = vmax.f32 %v798_v3, 0.0  ;;  %v1334_v48 = vpack.c.bf16 %v1019_v14, %v1019_v14  ;;  %v1857_v3 = vld [vmem:[%s2418_s4 + $0x8] sm:$0xff]  }
 0x2bc   :  { %v804_v29 = vadd.f32 %v803_v28, %v734_v4  ;;  %v817_v30 = vmax.f32 %v800_v25, 0.0  ;;  %v1359_v59 = vsel %vm539_vm6, %v1340_v53, 0  ;;  %v1510_v4 = vpop.permute.xlu0 %1509 }
 0x2bd   :  { %v818_v31 = vmax.f32 %v802_v60, 0.0  ;;  %v1434_v52 = vsel %vm539_vm6, %v1334_v48, 0 }
 0x2be   :  { %v819_v36 = vmax.f32 %v804_v29, 0.0 }
 0x2bf   :  { %v825_v39 = vpack.c.bf16 %v818_v31, %v816_v34 }
 0x2c0   :  { %v826_v41 = vpack.c.bf16 %v819_v36, %v817_v30  ;;  %v807_v17 = vpop.f32.mrb[4].mxu1  ;;  %v1548_v25 = vpop.permute.xlu0 %1547 }
 0x2c1   :  { %v808_v37 = vadd.f32 %v807_v17, %v739_v7  ;;  %v809_v42 = vpop.f32.mrb[5].mxu1 }
 0x2c2   :  { %v810_v46 = vadd.f32 %v809_v42, %v739_v7  ;;  %v811_v22 = vpop.f32.mrb[6].mxu1  ;;  %838 = vmatprep.subr.bf16.mxu1 %v826_v41 }
 0x2c3   :  { %v812_v61 = vadd.f32 %v811_v22, %v744_v21  ;;  %v813_v38 = vpop.f32.mrb[7].mxu1  ;;  %839 = vmatpush1.bf16.msra.mxu1 %v825_v39  ;;  %v820_v57 = vmax.f32 %v808_v37, 0.0 }
 0x2c4   :  { %v814_v62 = vadd.f32 %v813_v38, %v744_v21  ;;  %v821_v6 = vmax.f32 %v810_v46, 0.0  ;;  %v2384_v26 = vpop.permute.xlu0 %1557 }
 0x2c5   :  { %v822_v2 = vmax.f32 %v812_v61, 0.0 }
 0x2c6   :  { %v823_v49 = vmax.f32 %v814_v62, 0.0 }
 0x2c7   :  { %v827_v9 = vpack.c.bf16 %v822_v2, %v820_v57 }
 0x2c8   :  { %v828_v63 = vpack.c.bf16 %v823_v49, %v821_v6  ;;  %v833_v60 = vpop.permute.xlu0 %832 }
 0x2ca   :  { %840 = vmatprep.subr.bf16.mxu1 %v828_v63 }
 0x2cb   :  { %841 = vmatpush1.bf16.msra.mxu1 %v827_v9  ;;  %v1860_v9 = vld [vmem:[%s2419_s5] sm:$0xff]  }
 0x2cc   :  { %1779 = vmatprep.subr.msk.bf16.mxu1 %vm539_vm6, %v1341_v12 }
 0x2ce   :  { %1758 = vmatmul.mubr.msk.bf16.vlgmr.msra.gmra.mrb[8].mxu1 %vm756_vm2, %v824_v55 }
 0x2cf   :  { %1365 = vmatpush1.bf16.msra.mxu1 %v1359_v59  ;;  %1396 = vmatprep.mubr.bf16.mxu1 %v1902_v1 }
 0x2d0   :  { %1784 = vmatprep.subr.msk.bf16.mxu1 %vm539_vm6, %v1335_v56 }
 0x2d6   :  { %1780 = vmatmul.mubr.msk.bf16.vlgmr.msra.gmra.mrb[12].mxu1 %vm532_vm1, %v1856_v40 }
 0x2d7   :  { %1440 = vmatpush1.bf16.msra.mxu1 %v1434_v52  ;;  %1406 = vmatprep.mubr.bf16.mxu1 %v1902_v1 }
 0x2de   :  { %1781 = vmatmul.mubr.msk.bf16.gmra.mrb[16].mxu1 %vm532_vm1, %v1857_v3 }
 0x2df   :  { %1471 = vmatprep.mubr.bf16.mxu1 %v1902_v1 }
 0x2e6   :  { %1785 = vmatmul.mubr.msk.bf16.vlgmr.msra.gmra.mrb[12].mxu1 %vm532_vm1, %v1858_v54 }
 0x2e7   :  { %1481 = vmatprep.mubr.bf16.mxu1 %v1902_v1 }
 0x2ee   :  { %1786 = vmatmul.mubr.msk.bf16.gmra.mrb[16].mxu1 %vm532_vm1, %v1859_v24 }
 0x3a1   :  { %v872_v28 = vpop.f32.mrb[8].mxu1 }
 0x3a2   :  { %v873_v23 = vadd.f32 %v872_v28, %v833_v60  ;;  %v874_v5 = vpop.f32.mrb[9].mxu1 }
 0x3a3   :  { %v875_v58 = vadd.f32 %v874_v5, %v833_v60  ;;  %v876_v7 = vpop.f32.mrb[10].mxu1 }
 0x3a4   :  { %v877_v29 = vpop.f32.mrb[11].mxu1 }
 0x3a5   :  { %v881_v33 = vcombine.low %v873_v23, %v875_v58 }
 0x3a7   :  { %1759 = vst.sshfl [vmem:[#allocation2] sm:$0x33 pattern:$0x76325410] %v881_v33  ;;  %v1642_v33 = vld [vmem:[%s2421_s7] sm:$0x1] }
 0x3b9   :  { %v1473_v34 = vpop.f32.mrb[12].mxu1 }
 0x3ba   :  { %v1517_v31 = vadd.f32 %v1500_v16, %v1473_v34  ;;  %v1475_v35 = vpop.f32.mrb[13].mxu1 }
 0x3bb   :  { %v1518_v30 = vadd.f32 %v1500_v16, %v1475_v35  ;;  %v1477_v36 = vpop.f32.mrb[14].mxu1 }
 0x3bc   :  { %v1519_v39 = vadd.f32 %v1505_v27, %v1477_v36  ;;  %v1479_v41 = vpop.f32.mrb[15].mxu1  ;;  %v1525_v19 = vmax.f32 %v1517_v31, 0.0 }
 0x3bd   :  { %v1520_v17 = vadd.f32 %v1505_v27, %v1479_v41  ;;  %v1526_v42 = vmax.f32 %v1518_v30, 0.0 }
 0x3be   :  { %v1527_v37 = vmax.f32 %v1519_v39, 0.0 }
 0x3bf   :  { %v1528_v18 = vmax.f32 %v1520_v17, 0.0 }
 0x3c0   :  { %v1537_v43 = vpack.c.bf16 %v1527_v37, %v1525_v19 }
 0x3c1   :  { %v1538_v20 = vpack.c.bf16 %v1528_v18, %v1526_v42  ;;  %v1483_v21 = vpop.f32.mrb[16].mxu1 }
 0x3c2   :  { %v1521_v46 = vadd.f32 %v1510_v4, %v1483_v21  ;;  %v1485_v22 = vpop.f32.mrb[17].mxu1 }
 0x3c3   :  { %v1522_v61 = vadd.f32 %v1510_v4, %v1485_v22  ;;  %v1487_v38 = vpop.f32.mrb[18].mxu1  ;;  %1581 = vmatprep.subr.bf16.mxu0 %v1538_v20 }
 0x3c4   :  { %v1523_v62 = vadd.f32 %v1515_v50, %v1487_v38  ;;  %v1489_v0 = vpop.f32.mrb[19].mxu1  ;;  %1582 = vmatpush1.bf16.msra.mxu0 %v1537_v43  ;;  %v1529_v57 = vmax.f32 %v1521_v46, 0.0 }
 0x3c5   :  { %v1524_v44 = vadd.f32 %v1515_v50, %v1489_v0  ;;  %v1530_v8 = vmax.f32 %v1522_v61, 0.0 }
 0x3c6   :  { %v1531_v2 = vmax.f32 %v1523_v62, 0.0 }
 0x3c7   :  { %v1532_v45 = vmax.f32 %v1524_v44, 0.0 }
 0x3c8   :  { %v1539_v6 = vpack.c.bf16 %v1531_v2, %v1529_v57 }
 0x3c9   :  { %v1540_v49 = vpack.c.bf16 %v1532_v45, %v1530_v8 }
 0x3cb   :  { %1583 = vmatprep.subr.bf16.mxu0 %v1540_v49 }
 0x3cc   :  { %1584 = vmatpush1.bf16.msra.mxu0 %v1539_v6 }
 0x3cf   :  { %1793 = vmatmul.mubr.msk.bf16.vlgmr.msra.gmra.mrb[8].mxu0 %vm756_vm2, %v1860_v9 }
 0x3d0   :  { %1623 = vmatprep.mubr.bf16.mxu0 %v1902_v1 }
 0x3d7   :  { %1794 = vmatmul.mubr.msk.bf16.gmra.mrb[12].mxu0 %vm756_vm2, %v1861_v10 }
 0x3d8   :  { %1688 = vmatprep.mubr.bf16.mxu0 %v1902_v1  ;;  %v1563_v1 = vpop.permute.xlu1 %1562 }
 0x4a2   :  { %v1615_v11 = vpop.f32.mrb[8].mxu0 }
 0x4a3   :  { %v1616_v63 = vadd.f32 %v1615_v11, %v1548_v25  ;;  %v1617_v32 = vpop.f32.mrb[9].mxu0 }
 0x4a4   :  { %v1618_v51 = vadd.f32 %v1617_v32, %v1548_v25  ;;  %v1619_v12 = vpop.f32.mrb[10].mxu0 }
 0x4a5   :  { %v1620_v53 = vadd.f32 %v1619_v12, %v1553_v47  ;;  %v1621_v55 = vpop.f32.mrb[11].mxu0  ;;  %v1634_v15 = vmax.f32 %v1616_v63, 0.0 }
 0x4a6   :  { %v1622_v13 = vadd.f32 %v1621_v55, %v1553_v47  ;;  %v1635_v56 = vmax.f32 %v1618_v51, 0.0 }
 0x4a7   :  { %v1636_v59 = vmax.f32 %v1620_v53, 0.0 }
 0x4a8   :  { %v1637_v14 = vmax.f32 %v1622_v13, 0.0 }
 0x4a9   :  { %v1643_v40 = vpack.c.bf16 %v1636_v59, %v1634_v15 }
 0x4aa   :  { %v1644_v48 = vpack.c.bf16 %v1637_v14, %v1635_v56  ;;  %v1625_v52 = vpop.f32.mrb[12].mxu0 }
 0x4ab   :  { %v1626_v3 = vadd.f32 %v1625_v52, %v2384_v26  ;;  %v1627_v54 = vpop.f32.mrb[13].mxu0 }
 0x4ac   :  { %v1628_v24 = vadd.f32 %v1627_v54, %v2384_v26  ;;  %v1629_v16 = vpop.f32.mrb[14].mxu0  ;;  %1656 = vmatprep.subr.bf16.mxu0 %v1644_v48  ;;  %v1651_v26 = vpop.permute.xlu1 %1650 }
 0x4ad   :  { %v1630_v4 = vadd.f32 %v1629_v16, %v1563_v1  ;;  %v1631_v25 = vpop.f32.mrb[15].mxu0  ;;  %1657 = vmatpush1.bf16.msra.mxu0 %v1643_v40  ;;  %v1638_v28 = vmax.f32 %v1626_v3, 0.0 }
 0x4ae   :  { %v1632_v60 = vadd.f32 %v1631_v25, %v1563_v1  ;;  %v1639_v5 = vmax.f32 %v1628_v24, 0.0 }
 0x4af   :  { %v1640_v23 = vmax.f32 %v1630_v4, 0.0 }
 0x4b0   :  { %v1641_v58 = vmax.f32 %v1632_v60, 0.0 }
 0x4b1   :  { %v1645_v7 = vpack.c.bf16 %v1640_v23, %v1638_v28 }
 0x4b2   :  { %v1646_v29 = vpack.c.bf16 %v1641_v58, %v1639_v5 }
 0x4b4   :  { %1658 = vmatprep.subr.bf16.mxu0 %v1646_v29 }
 0x4b5   :  { %1659 = vmatpush1.bf16.msra.mxu0 %v1645_v7 }
 0x4b8   :  { %1795 = vmatmul.mubr.msk.bf16.vlgmr.msra.gmra.mrb[16].mxu0 %vm756_vm2, %v1642_v33 }
 0x58b   :  { %v1690_v34 = vpop.f32.mrb[16].mxu0 }
 0x58c   :  { %v1691_v31 = vadd.f32 %v1690_v34, %v1651_v26  ;;  %v1692_v35 = vpop.f32.mrb[17].mxu0 }
 0x58d   :  { %v1693_v27 = vadd.f32 %v1692_v35, %v1651_v26  ;;  %v1694_v30 = vpop.f32.mrb[18].mxu0 }
 0x58e   :  { %v1695_v36 = vpop.f32.mrb[19].mxu0 }
 0x58f   :  { %v1699_v39 = vcombine.low %v1691_v31, %v1693_v27 }
 0x591   :  { %1796 = vst.sshfl [vmem:[#allocation2 + $0x4] sm:$0x33 pattern:$0x76325410] %v1699_v39 }
 0x592   :  { %1889 = shalt.err (!%p1886_p4)
}
 0x593   :  { %s1890_s0 = scalar_lea.hbm %s2423_s9, 128 }
 0x594   :  { %p1891_p5 = scmp.ne.s32.totalorder %s2423_s9, %s1890_s0  ;;  %p1894_p6 = scmp.lt.u32.totalorder %s1890_s0, %s2423_s9 }
 0x596   :  { %p1896_p7 = pnand %p1894_p6, %p1891_p5 }
 0x598   :  { %1899 = shalt.err (!%p1896_p7)
}
 0x599   :  { %s1912_s2 = smov 64   ;;  %s1913_s8 = smov 4  }
 0x59a   :  { %1721 = dma.vmem_to_hbm [thread:$0]  %s1716_s24, 128, %s2423_s9, [#allocation3], %s1912_s2, %s1912_s2, %s1913_s8  }
 0x59b   :  { %1900 = dma.done.wait [#allocation3], 128  }
 0x59c   :  { %1901 = vsyncadd [#allocation3], 4294967168 }
 0x59d   :  { %1725 = vsyncpa [#allocation3], 1 }

</bundles_post_ra>
